<compile_context>
chip_gen: v5e
topology: v5e:2x2
jax: 0.10.0
libtpu: 0.0.40
codegen_flags: <defaults>
</compile_context>

<pallas_src>
import math

import jax
import jax.numpy as jnp
from jax.experimental import pallas as pl
from jax.experimental.pallas import tpu as pltpu


def _disc_kernel(x_ref, w1_ref, b1_ref, w2_ref, b2_ref, w3_ref, b3_ref,
                 w4_ref, b4_ref, o_ref):
    x = x_ref[...]                                    # (2, TB) f32
    w1 = w1_ref[...]                                  # (256, 2) f32

    # Layer 1 (fan_in=2): VPU FMAs, not the MXU.
    h = (w1[:, 0:1] * x[0:1, :]
         + w1[:, 1:2] * x[1:2, :]
         + b1_ref[...])                               # (256, TB) f32
    h = jnp.maximum(h, 0.0)
    # Dropout(0.3): identity in eval mode.

    # Layer 2: (128,256) @ (256,TB) on the MXU, bf16 operands, f32 accumulate.
    h = jnp.dot(w2_ref[...], h.astype(jnp.bfloat16),
                preferred_element_type=jnp.float32) + b2_ref[...]
    h = jnp.maximum(h, 0.0)                           # (128, TB) f32
    # Dropout(0.3): identity in eval mode.

    # Layer 3: (64,128) @ (128,TB) on the MXU, bf16 operands, f32 accumulate.
    h = jnp.dot(w3_ref[...], h.astype(jnp.bfloat16),
                preferred_element_type=jnp.float32) + b3_ref[...]
    h = jnp.maximum(h, 0.0)                           # (64, TB) f32
    # Dropout(0.3): identity in eval mode.

    # Layer 4 (single neuron): VPU multiply + sublane reduce (XLU), keeps the
    # output lane-dense (1, TB) instead of a masked 1-lane store.
    z = jnp.sum(h * w4_ref[...], axis=0, keepdims=True) + b4_ref[...]

    # Sigmoid: exp + approx reciprocal both use the EUP slot.
    o_ref[...] = pl.reciprocal(1.0 + jnp.exp(-z), approx=True)


def discriminator_forward(x, params, *, tile_b=512):
    """x: (B, 2) float32.  params: PyTorch-native weights, see init_params."""
    assert tile_b % 128 == 0, "tile_b must be a multiple of 128 (lane width)"
    B = x.shape[0]

    # Don't use a tile larger than the lane-padded batch; pad batch to the tile.
    tile_b = min(tile_b, pl.cdiv(B, 128) * 128)
    Bp = pl.cdiv(B, tile_b) * tile_b

    xT = x.astype(jnp.float32).T                      # (2, B) — batch on lanes
    if Bp != B:
        xT = jnp.pad(xT, ((0, 0), (0, Bp - B)))

    w1, b1 = params["w1"], params["b1"]
    w2, b2 = params["w2"], params["b2"]
    w3, b3 = params["w3"], params["b3"]
    w4, b4 = params["w4"], params["b4"]

    # Weight blocks: same block index every grid step -> resident in VMEM.
    full = lambda a: pl.BlockSpec(a.shape, lambda i: (0, 0))

    out = pl.pallas_call(
        _disc_kernel,
        out_shape=jax.ShapeDtypeStruct((1, Bp), jnp.float32),
        grid_spec=pltpu.PrefetchScalarGridSpec(
            num_scalar_prefetch=0,
            grid=(Bp // tile_b,),
            in_specs=[
                pl.BlockSpec((2, tile_b), lambda i: (0, i)),   # x tile (lane-dense)
                full(w1), full(b1),
                full(w2), full(b2),
                full(w3), full(b3),
                full(w4), full(b4),
            ],
            out_specs=pl.BlockSpec((1, tile_b), lambda i: (0, i)),  # lane-dense out
        ),
        compiler_params=pltpu.CompilerParams(
            dimension_semantics=("parallel",)),       # megacore sharding on v7x
    )(xT, w1, b1, w2, b2, w3, b3, w4, b4)

    return out[0, :B].reshape(B, 1)


def init_params(key):
    """nn.Linear-style init (uniform ±1/sqrt(fan_in)), PyTorch-native (out, in)
    weight shapes, biases stored as (out, 1).  w2/w3 are bf16 (MXU-native);
    the last layer is stored as a (64, 1) column for the VPU reduce."""
    dims = [(256, 2), (128, 256), (64, 128), (1, 64)]
    params = {}
    for idx, (fan_out, fan_in) in enumerate(dims, start=1):
        key, kw, kb = jax.random.split(key, 3)
        bound = 1.0 / math.sqrt(fan_in)
        params[f"w{idx}"] = jax.random.uniform(
            kw, (fan_out, fan_in), jnp.float32, -bound, bound)
        params[f"b{idx}"] = jax.random.uniform(
            kb, (fan_out, 1), jnp.float32, -bound, bound)
    params["w2"] = params["w2"].astype(jnp.bfloat16)
    params["w3"] = params["w3"].astype(jnp.bfloat16)
    params["w4"] = params["w4"].T                     # (64, 1) f32
    return params


def _reference_forward(x, params):
    """Pure-JAX reference mirroring the kernel numerics (bf16 MXU layers)."""
    h = jnp.maximum(x @ params["w1"].T + params["b1"].T, 0.0)
    h = jnp.dot(h.astype(jnp.bfloat16), params["w2"].T,
                preferred_element_type=jnp.float32) + params["b2"].T
    h = jnp.maximum(h, 0.0)
    h = jnp.dot(h.astype(jnp.bfloat16), params["w3"].T,
                preferred_element_type=jnp.float32) + params["b3"].T
    h = jnp.maximum(h, 0.0)
    z = h @ params["w4"] + params["b4"].T
    return jax.nn.sigmoid(z)


if __name__ == "__main__":
    key = jax.random.PRNGKey(0)
    kx, kp = jax.random.split(key)

    B = 1000  # deliberately not a multiple of the tile to exercise padding
    x = jax.random.normal(kx, (B, 2), dtype=jnp.float32)
    params = init_params(kp)

    out = discriminator_forward(x, params, tile_b=256)   # grid = 4 steps
    out = jax.block_until_ready(out)

    ref = _reference_forward(x, params)
    assert out.shape == (B, 1)
    assert jnp.allclose(out, ref, atol=5e-3, rtol=0.0), \
        float(jnp.max(jnp.abs(out - ref)))

    print("KERNEL_OK")
</pallas_src>

<mosaic_0001>
module attributes {stable_mosaic.version = 11 : i64} {
  func.func @_disc_kernel(%arg0: i32, %arg1: memref<2x256xf32, #tpu.memory_space<vmem>>, %arg2: memref<256x2xf32, #tpu.memory_space<vmem>>, %arg3: memref<256x1xf32, #tpu.memory_space<vmem>>, %arg4: memref<128x256xbf16, #tpu.memory_space<vmem>>, %arg5: memref<128x1xf32, #tpu.memory_space<vmem>>, %arg6: memref<64x128xbf16, #tpu.memory_space<vmem>>, %arg7: memref<64x1xf32, #tpu.memory_space<vmem>>, %arg8: memref<64x1xf32, #tpu.memory_space<vmem>>, %arg9: memref<1x1xf32, #tpu.memory_space<vmem>>, %arg10: memref<1x256xf32, #tpu.memory_space<vmem>>) attributes {dimension_semantics = [#tpu.dimension_semantics<parallel>], iteration_bounds = array<i64: 4>, scalar_prefetch = 0 : i64, scratch_operands = 0 : i64, tpu.core_type = #tpu.core_type<tc>, window_params = [{transform_indices = @transform_0, window_bounds = array<i64: 2, 256>}, {pipeline_mode = #tpu.pipeline_mode<synchronous>, transform_indices = @transform_1, window_bounds = array<i64: 256, 2>}, {pipeline_mode = #tpu.pipeline_mode<synchronous>, transform_indices = @transform_2, window_bounds = array<i64: 256, 1>}, {pipeline_mode = #tpu.pipeline_mode<synchronous>, transform_indices = @transform_3, window_bounds = array<i64: 128, 256>}, {pipeline_mode = #tpu.pipeline_mode<synchronous>, transform_indices = @transform_4, window_bounds = array<i64: 128, 1>}, {pipeline_mode = #tpu.pipeline_mode<synchronous>, transform_indices = @transform_5, window_bounds = array<i64: 64, 128>}, {pipeline_mode = #tpu.pipeline_mode<synchronous>, transform_indices = @transform_6, window_bounds = array<i64: 64, 1>}, {pipeline_mode = #tpu.pipeline_mode<synchronous>, transform_indices = @transform_7, window_bounds = array<i64: 64, 1>}, {pipeline_mode = #tpu.pipeline_mode<synchronous>, transform_indices = @transform_8, window_bounds = array<i64: 1, 1>}, {transform_indices = @transform_9, window_bounds = array<i64: 1, 256>}]} {
    %c0 = arith.constant 0 : index
    %c0_0 = arith.constant 0 : index
    %0 = vector.load %arg1[%c0, %c0_0] : memref<2x256xf32, #tpu.memory_space<vmem>>, vector<2x256xf32>
    %c0_1 = arith.constant 0 : index
    %c0_2 = arith.constant 0 : index
    %1 = vector.load %arg2[%c0_1, %c0_2] : memref<256x2xf32, #tpu.memory_space<vmem>>, vector<256x2xf32>
    %2 = vector.extract_strided_slice %1 {offsets = [0, 0], sizes = [256, 1], strides = [1, 1]} : vector<256x2xf32> to vector<256x1xf32>
    %3 = vector.extract_strided_slice %0 {offsets = [0, 0], sizes = [1, 256], strides = [1, 1]} : vector<2x256xf32> to vector<1x256xf32>
    %4 = vector.broadcast %2 : vector<256x1xf32> to vector<256x256xf32>
    %5 = vector.broadcast %3 : vector<1x256xf32> to vector<256x256xf32>
    %6 = arith.mulf %4, %5 : vector<256x256xf32>
    %7 = vector.extract_strided_slice %1 {offsets = [0, 1], sizes = [256, 1], strides = [1, 1]} : vector<256x2xf32> to vector<256x1xf32>
    %8 = vector.extract_strided_slice %0 {offsets = [1, 0], sizes = [1, 256], strides = [1, 1]} : vector<2x256xf32> to vector<1x256xf32>
    %9 = vector.broadcast %7 : vector<256x1xf32> to vector<256x256xf32>
    %10 = vector.broadcast %8 : vector<1x256xf32> to vector<256x256xf32>
    %11 = arith.mulf %9, %10 : vector<256x256xf32>
    %12 = arith.addf %6, %11 : vector<256x256xf32>
    %c0_3 = arith.constant 0 : index
    %c0_4 = arith.constant 0 : index
    %13 = vector.load %arg3[%c0_3, %c0_4] : memref<256x1xf32, #tpu.memory_space<vmem>>, vector<256x1xf32>
    %14 = vector.broadcast %13 : vector<256x1xf32> to vector<256x256xf32>
    %15 = arith.addf %12, %14 : vector<256x256xf32>
    %cst = arith.constant 0.000000e+00 : f32
    %16 = vector.broadcast %cst : f32 to vector<256x256xf32>
    %17 = arith.maximumf %15, %16 : vector<256x256xf32>
    %c0_5 = arith.constant 0 : index
    %c0_6 = arith.constant 0 : index
    %18 = vector.load %arg4[%c0_5, %c0_6] : memref<128x256xbf16, #tpu.memory_space<vmem>>, vector<128x256xbf16>
    %19 = arith.truncf %17 : vector<256x256xf32> to vector<256x256xbf16>
    %cst_7 = arith.constant dense<0.000000e+00> : vector<128x256xf32>
    %20 = tpu.matmul %18, %19, %cst_7 {dimension_numbers = #tpu.dot_dimension_numbers<[1], [0], [0], [1], [0, 0, 1, 1], [], []>} : vector<128x256xbf16>, vector<256x256xbf16>, vector<128x256xf32> -> vector<128x256xf32>
    %c0_8 = arith.constant 0 : index
    %c0_9 = arith.constant 0 : index
    %21 = vector.load %arg5[%c0_8, %c0_9] : memref<128x1xf32, #tpu.memory_space<vmem>>, vector<128x1xf32>
    %22 = vector.broadcast %21 : vector<128x1xf32> to vector<128x256xf32>
    %23 = arith.addf %20, %22 : vector<128x256xf32>
    %cst_10 = arith.constant 0.000000e+00 : f32
    %24 = vector.broadcast %cst_10 : f32 to vector<128x256xf32>
    %25 = arith.maximumf %23, %24 : vector<128x256xf32>
    %c0_11 = arith.constant 0 : index
    %c0_12 = arith.constant 0 : index
    %26 = vector.load %arg6[%c0_11, %c0_12] : memref<64x128xbf16, #tpu.memory_space<vmem>>, vector<64x128xbf16>
    %27 = arith.truncf %25 : vector<128x256xf32> to vector<128x256xbf16>
    %cst_13 = arith.constant dense<0.000000e+00> : vector<64x256xf32>
    %28 = tpu.matmul %26, %27, %cst_13 {dimension_numbers = #tpu.dot_dimension_numbers<[1], [0], [0], [1], [0, 0, 1, 1], [], []>} : vector<64x128xbf16>, vector<128x256xbf16>, vector<64x256xf32> -> vector<64x256xf32>
    %c0_14 = arith.constant 0 : index
    %c0_15 = arith.constant 0 : index
    %29 = vector.load %arg7[%c0_14, %c0_15] : memref<64x1xf32, #tpu.memory_space<vmem>>, vector<64x1xf32>
    %30 = vector.broadcast %29 : vector<64x1xf32> to vector<64x256xf32>
    %31 = arith.addf %28, %30 : vector<64x256xf32>
    %cst_16 = arith.constant 0.000000e+00 : f32
    %32 = vector.broadcast %cst_16 : f32 to vector<64x256xf32>
    %33 = arith.maximumf %31, %32 : vector<64x256xf32>
    %c0_17 = arith.constant 0 : index
    %c0_18 = arith.constant 0 : index
    %34 = vector.load %arg8[%c0_17, %c0_18] : memref<64x1xf32, #tpu.memory_space<vmem>>, vector<64x1xf32>
    %35 = vector.broadcast %34 : vector<64x1xf32> to vector<64x256xf32>
    %36 = arith.mulf %33, %35 : vector<64x256xf32>
    %cst_19 = arith.constant dense<0.000000e+00> : vector<256xf32>
    %37 = vector.multi_reduction <add>, %36, %cst_19 [0] : vector<64x256xf32> to vector<256xf32>
    %38 = vector.shape_cast %37 : vector<256xf32> to vector<1x256xf32>
    %c0_20 = arith.constant 0 : index
    %c0_21 = arith.constant 0 : index
    %39 = vector.load %arg9[%c0_20, %c0_21] : memref<1x1xf32, #tpu.memory_space<vmem>>, vector<1x1xf32>
    %40 = vector.broadcast %39 : vector<1x1xf32> to vector<1x256xf32>
    %41 = arith.addf %38, %40 : vector<1x256xf32>
    %cst_22 = arith.constant 0.000000e+00 : f32
    %42 = vector.broadcast %cst_22 : f32 to vector<1x256xf32>
    %43 = arith.subf %42, %41 : vector<1x256xf32>
    %44 = math.exp %43 : vector<1x256xf32>
    %cst_23 = arith.constant 1.000000e+00 : f32
    %45 = vector.broadcast %cst_23 : f32 to vector<1x256xf32>
    %46 = arith.addf %45, %44 : vector<1x256xf32>
    %47 = tpu.reciprocal %46 {approx = true} : vector<1x256xf32> -> vector<1x256xf32>
    %c0_24 = arith.constant 0 : index
    %c0_25 = arith.constant 0 : index
    %48 = vector.load %arg10[%c0_24, %c0_25] : memref<1x256xf32, #tpu.memory_space<vmem>>, vector<1x256xf32>
    tpu.vector_store %arg10[%c0_24, %c0_25], %47 {strides = array<i32>} : memref<1x256xf32, #tpu.memory_space<vmem>>, vector<1x256xf32>,
    return
  }
  func.func @transform_0(%arg0: i32) -> (i32, i32) {
    %c0_i32 = arith.constant 0 : i32
    %c0_i32_0 = arith.constant 0 : i32
    return %c0_i32, %arg0 : i32, i32
  }
  func.func @transform_1(%arg0: i32) -> (i32, i32) {
    %c0_i32 = arith.constant 0 : i32
    %c0_i32_0 = arith.constant 0 : i32
    %c0_i32_1 = arith.constant 0 : i32
    return %c0_i32, %c0_i32_0 : i32, i32
  }
  func.func @transform_2(%arg0: i32) -> (i32, i32) {
    %c0_i32 = arith.constant 0 : i32
    %c0_i32_0 = arith.constant 0 : i32
    %c0_i32_1 = arith.constant 0 : i32
    return %c0_i32, %c0_i32_0 : i32, i32
  }
  func.func @transform_3(%arg0: i32) -> (i32, i32) {
    %c0_i32 = arith.constant 0 : i32
    %c0_i32_0 = arith.constant 0 : i32
    %c0_i32_1 = arith.constant 0 : i32
    return %c0_i32, %c0_i32_0 : i32, i32
  }
  func.func @transform_4(%arg0: i32) -> (i32, i32) {
    %c0_i32 = arith.constant 0 : i32
    %c0_i32_0 = arith.constant 0 : i32
    %c0_i32_1 = arith.constant 0 : i32
    return %c0_i32, %c0_i32_0 : i32, i32
  }
  func.func @transform_5(%arg0: i32) -> (i32, i32) {
    %c0_i32 = arith.constant 0 : i32
    %c0_i32_0 = arith.constant 0 : i32
    %c0_i32_1 = arith.constant 0 : i32
    return %c0_i32, %c0_i32_0 : i32, i32
  }
  func.func @transform_6(%arg0: i32) -> (i32, i32) {
    %c0_i32 = arith.constant 0 : i32
    %c0_i32_0 = arith.constant 0 : i32
    %c0_i32_1 = arith.constant 0 : i32
    return %c0_i32, %c0_i32_0 : i32, i32
  }
  func.func @transform_7(%arg0: i32) -> (i32, i32) {
    %c0_i32 = arith.constant 0 : i32
    %c0_i32_0 = arith.constant 0 : i32
    %c0_i32_1 = arith.constant 0 : i32
    return %c0_i32, %c0_i32_0 : i32, i32
  }
  func.func @transform_8(%arg0: i32) -> (i32, i32) {
    %c0_i32 = arith.constant 0 : i32
    %c0_i32_0 = arith.constant 0 : i32
    %c0_i32_1 = arith.constant 0 : i32
    return %c0_i32, %c0_i32_0 : i32, i32
  }
  func.func @transform_9(%arg0: i32) -> (i32, i32) {
    %c0_i32 = arith.constant 0 : i32
    %c0_i32_0 = arith.constant 0 : i32
    return %c0_i32, %arg0 : i32, i32
  }
}

</mosaic_0001>

<bundles_post_ra>
// kernel: tpu_custom_call.1
= control target key start
LH: loop header
LB: loop body
LE: loop exit
PB: predicated region body
PF: predicated region fallthrough
CT: control target
= control target key end

     0   :  { %s3618_s0 = inlined_call_operand.vmem [shape: f32[2,1024], index: 0, kind: input, shape index: {}]   ;;  %s3619_s1 = inlined_call_operand.vmem [shape: f32[256,2], index: 1, kind: input, shape index: {}]   ;;  %s3620_s2 = inlined_call_operand.vmem [shape: f32[256,1], index: 2, kind: input, shape index: {}]   ;;  %s3621_s3 = inlined_call_operand.vmem [shape: bf16[128,256], index: 3, kind: input, shape index: {}]   ;;  %s3622_s4 = inlined_call_operand.vmem [shape: f32[128,1], index: 4, kind: input, shape index: {}]   ;;  %s3623_s5 = inlined_call_operand.vmem [shape: bf16[64,128], index: 5, kind: input, shape index: {}]   ;;  %s3624_s6 = inlined_call_operand.vmem [shape: f32[64,1], index: 6, kind: input, shape index: {}]   ;;  %s3625_s7 = inlined_call_operand.vmem [shape: f32[64,1], index: 7, kind: input, shape index: {}]   ;;  %s3626_s8 = inlined_call_operand.<no memory space> [shape: f32[1,1], index: 8, kind: input, shape index: {}]   ;;  %s3627_s9 = inlined_call_operand.hbm [shape: f32[1,1024], index: 9, kind: output, shape index: {}]  }
   0x1   :  { %v14_v0 = vstv %s3626_s8 }
   0x2   :  { %15 = vst [vmem:[#allocation2] sm:$0x1] %v14_v0 }
   0x3   :  { %16 = vsyncpa [#allocation4], 0 }
   0x4   :  { %18 = vsyncpa [#allocation4 + $0x1], 0  ;;  %s2334_s11 = smov 0   ;;  %s2336_s12 = smov 0  }
   0x5   :  { %s2338_s13 = smov 0   ;;  %s2340_s14 = smov 0  }
   0x6 LB: > { %s1998_s8 = sadd.s32 4294967295, %s2277_s14   ;;  %s1999_s15 = sadd.s32 4294967294, %s2277_s14   ;;  %s2277_s14 = sphi %s2340_s14, %s3717_s14   ;;  %s2273_s13 = sphi %s2338_s13, %s3716_s13   ;;  %s2269_s12 = sphi %s2336_s12, %s3715_s12   ;;  %s2265_s11 = sphi %s2334_s11, %s3714_s11  }
   0x7   : > { %s2357_s16 = sadd.s32 1, %s2277_s14   ;;  %s225_s17 = sadd.s32 1, %s2273_s13 }
   0x8   : > { %s222_s18 = ssub.s32 %s2277_s14, %s2357_s16  ;;  %p235_p0 = scmp.ne.s32.totalorder %s2273_s13, %s2269_s12 }
   0x9   : > { %p223_p1 = scmp.eq.s32.totalorder %s222_s18, 0  ;;  %p236_p2 = scmp.eq.s32.totalorder %s1998_s8, 3 }
   0xa   : > { %p241_p3 = scmp.ne.s32.totalorder %s2269_s12, %s2265_s11  ;;  %p242_p4 = scmp.eq.s32.totalorder %s1999_s15, 3 }
   0xb   : > { %s2369_s19 = scalar_select %p223_p1, %s2273_s13, %s225_s17  }
   0xc   : > { %p2371_p5 = por %p236_p2, %p235_p0  ;;  %p2375_p6 = por %p242_p4, %p241_p3 }
   0xd   : > { %p2002_p7 = scmp.ge.s32.totalorder %s2277_s14, 1  ;;  %p293_p8 = scmp.lt.s32.totalorder %s2277_s14, 5 }
   0xf   : > { %p294_p9 = pnand %p2002_p7, %p293_p8 }
  0x11   : > { %297 = sbr.rel (%p294_p9) target bundleno = 997 (0x3e5), region = 56 }
  0x16   : > { %v351_v1 = vld [vmem:[%s3619_s1 + $0x70] sm:$0xff]  ;;  %v2387_v2 = vld [vmem:[%s3619_s1 + $0x20] sm:$0xff]  ;;  %v3628_v4 = vmov 1   ;;  %v3634_v5 = vmov 0   ;;  %v368_v6 = vld [vmem:[%s3619_s1 + $0xf8] sm:$0xff]  ;;  %s2520_s17 = sshll.u32 %s1998_s8, 1 }
  0x17   : > { %v2392_v3 = vld [vmem:[%s3619_s1 + $0x10] sm:$0xff]  ;;  %2169 = vset.pattern.permute.xlu0 %v3628_v4  ;;  %2168 = vset.pattern.permute.xlu2 %v3634_v5  ;;  %v2405_v7 = vld [vmem:[%s3619_s1 + $0x28] sm:$0xff]  ;;  %v2410_v8 = vld [vmem:[%s3619_s1 + $0x18] sm:$0xff]  ;;  %p330_p10 = scmp.lt.s32.totalorder %s2520_s17, 7  ;;  %s326_s10 = sand.u32 1, %s2269_s12   ;;  %vm1916_vm0 = vcmask 1040384  }
  0x18   : > { %2167 = vset.pattern.permute.xlu1 %v3634_v5  ;;  %657 = vperm.xlu0 %2169, %v351_v1   ;;  %v2417_v9 = vld [vmem:[%s3619_s1 + $0xe8] sm:$0xff]  ;;  %v2422_v10 = vld [vmem:[%s3619_s1 + $0x40] sm:$0xff]  ;;  %v2427_v11 = vld [vmem:[%s3619_s1 + $0x38] sm:$0xff]  ;;  %s2003_s15 = sshll.u32 %s326_s10, 1  ;;  %s1925_s26 = scalar_lea.sflag [#allocation4], %s326_s10 }
  0x19   : > { %391 = vperm.xlu2 %2168, %v2387_v2   ;;  %381 = vperm.xlu1 %2167, %v2392_v3   ;;  %v2435_v12 = vld [vmem:[%s3619_s1 + $0xd8] sm:$0xff]  ;;  %v2445_v14 = vld [vmem:[%s3619_s1 + $0x50] sm:$0xff]  ;;  %v2453_v15 = vld [vmem:[%s3619_s1 + $0xc8] sm:$0xff]  ;;  %s331_s23 = scalar_select %p330_p10, %s2520_s17, 7 }
  0x1a   : > { %v2440_v13 = vld [vmem:[%s3619_s1 + $0x58] sm:$0xff]  ;;  %v350_v16 = vld [vmem:[%s3619_s1 + $0x68] sm:$0xff]  ;;  %v2470_v19 = vld [vmem:[%s3619_s1 + $0x80] sm:$0xff]  ;;  %s2235_s30 = scalar_lea.hbm %s3627_s9, 8 }
  0x1b   : > { %v2462_v17 = vld [vmem:[%s3619_s1 + $0xa8] sm:$0xff]  ;;  %v2477_v20 = vld [vmem:[%s3619_s1 + $0xa0] sm:$0xff]  ;;  %v2482_v21 = vld [vmem:[%s3619_s1 + $0x98] sm:$0xff]  ;;  %s2005_s24 = sshll.u32 %s331_s23, 1  ;;  %s1935_s23 = scalar_lea.hbm %s3627_s9, %s2520_s17 }
  0x1c   : > { %v354_v18 = vld [vmem:[%s3619_s1 + $0x88] sm:$0xff]  ;;  %v2489_v22 = vld [vmem:[%s3619_s1 + $0xb8] sm:$0xff]  ;;  %v2494_v23 = vld [vmem:[%s3619_s1 + $0xb0] sm:$0xff]  ;;  %s333_s28 = scalar_lea.vmem %s3618_s0, %s2005_s24  ;;  %s328_s24 = scalar_lea.vmem [#allocation3], %s2003_s15 }
  0x1d   : > { %v2499_v24 = vld [vmem:[%s3619_s1] sm:$0xff]  ;;  %v367_v25 = vld [vmem:[%s3619_s1 + $0xf0] sm:$0xff]  ;;  %v352_v26 = vld [vmem:[%s3619_s1 + $0x78] sm:$0xff]  ;;  %s1937_s8 = sshll.u32 %s328_s24, 4  ;;  %s1939_s25 = sshll.u32 %s1935_s23, 4  ;;  %s1938_s8 = int_to_ptr.vmem [resolvable:$true] %s1937_s8  ;;  %s1940_s25 = int_to_ptr.hbm [resolvable:$true] %s1939_s25 }
  0x1e   : > { %v2514_v27 = vld [vmem:[%s3619_s1 + $0x8] sm:$0xff]  ;;  %v2526_v28 = vld [vmem:[%s3619_s1 + $0x30] sm:$0xff]  ;;  %v349_v30 = vld [vmem:[%s3619_s1 + $0x60] sm:$0xff]  ;;  %s2229_s27 = sshra.s32 %s1940_s25, 4  ;;  %s2230_s27 = int_to_ptr.hbm [resolvable:$true] %s2229_s27 }
  0x1f   : > { %v2535_v29 = vld [vmem:[%s3619_s1 + $0x48] sm:$0xff]  ;;  %v336_v31 = vld [vmem:[%s333_s28] sm:$0xf]  ;;  %v877_v35 = vld [vmem:[%s3620_s2 + $0x78] sm:$0xff]  ;;  %s2231_s28 = scalar_lea.hbm %s2230_s27, 2  ;;  %p2236_p0 = scmp.lt.s32.totalorder %s2230_s27, %s3627_s9 }
  0x20   : > { %725 = vperm.xlu0 %2169, %v368_v6   ;;  %v531_v32 = vperm.slane %v336_v31, 2  ;;  %v365_v33 = vld [vmem:[%s3619_s1 + $0xe0] sm:$0xff]  ;;  %v2572_v40 = vld [vmem:[%s3619_s1 + $0x90] sm:$0xff]  ;;  %v893_v41 = vld [vmem:[%s3620_s2 + $0xf8] sm:$0xff]  ;;  %v729_v44 = vperm.slane %v336_v31, 3  ;;  %v728_v48 = vperm.slane %v336_v31, 1  ;;  %p2232_p11 = scmp.ne.s32.totalorder %s2230_s27, %s2231_s28  ;;  %p2237_p1 = scmp.lt.s32.totalorder %s2235_s30, %s2231_s28 }
  0x21   : > { %396 = vperm.xlu2 %2168, %v2405_v7   ;;  %386 = vperm.xlu1 %2167, %v2410_v8   ;;  %v892_v42 = vld [vmem:[%s3620_s2 + $0xf0] sm:$0xff]  ;;  %v530_v54 = vperm.slane %v336_v31, 0 }
  0x22   : > { %v2549_v34 = vperm.slane %v531_v32, 0  ;;  %v2588_v46 = vperm.slane %v729_v44, 1  ;;  %v2606_v55 = vperm.slane %v728_v48, 1  ;;  %v876_v56 = vld [vmem:[%s3620_s2 + $0x70] sm:$0xff]  ;;  %v891_v48 = vld [vmem:[%s3620_s2 + $0xe8] sm:$0xff]  ;;  %p2233_p12 = pnand %p2232_p11, %p2371_p5  ;;  %p2238_p2 = por %p2237_p1, %p2236_p0 }
  0x23   : > { %v2613_v57 = vperm.slane %v530_v54, 0  ;;  %v872_v32 = vld [vmem:[%s3620_s2 + $0x50] sm:$0xff] }
  0x24   : > { %p2234_p13 = pneg %p2233_p12 }
  0x26   : > { %p2239_p3 = pnand %p2238_p2, %p2234_p13 }
  0x28   : > { %717 = vperm.xlu0 %2169, %v2417_v9  }
  0x29   : > { %411 = vperm.xlu2 %2168, %v2422_v10   ;;  %406 = vperm.xlu1 %2167, %v2427_v11  }
  0x30   : > { %709 = vperm.xlu0 %2169, %v2435_v12  }
  0x31   : > { %426 = vperm.xlu2 %2168, %v2440_v13   ;;  %421 = vperm.xlu1 %2167, %v2445_v14  }
  0x38   : > { %701 = vperm.xlu0 %2169, %v2453_v15  }
  0x39   : > { %441 = vperm.xlu2 %2168, %v351_v1   ;;  %436 = vperm.xlu1 %2167, %v350_v16  }
  0x40   : > { %685 = vperm.xlu0 %2169, %v2462_v17  }
  0x41   : > { %456 = vperm.xlu2 %2168, %v354_v18   ;;  %451 = vperm.xlu1 %2167, %v2470_v19  }
  0x48   : > { %669 = vperm.xlu0 %2169, %v354_v18  }
  0x49   : > { %471 = vperm.xlu2 %2168, %v2477_v20   ;;  %466 = vperm.xlu1 %2167, %v2482_v21  }
  0x50   : > { %2205 = vset.pattern.permute.xlu0 %v3634_v5 }
  0x51   : > { %486 = vperm.xlu2 %2168, %v2489_v22   ;;  %481 = vperm.xlu1 %2167, %v2494_v23  }
  0x52   : > { %371 = vperm.xlu0 %2205, %v2499_v24  }
  0x59   : > { %521 = vperm.xlu2 %2168, %v367_v25   ;;  %2170 = vset.pattern.permute.xlu1 %v3628_v4 }
  0x5a   : > { %661 = vperm.xlu1 %2170, %v352_v26   ;;  %376 = vperm.xlu0 %2205, %v2514_v27  }
  0x61   : > { %2172 = vset.pattern.permute.xlu2 %v3628_v4 }
  0x62   : > { %721 = vperm.xlu2 %2172, %v367_v25   ;;  %2171 = vset.pattern.permute.xlu1 %v3634_v5 }
  0x63   : > { %401 = vperm.xlu0 %2205, %v2526_v28   ;;  %526 = vperm.xlu1 %2171, %v368_v6   ;;  %v363_v6 = vld [vmem:[%s3619_s1 + $0xd0] sm:$0xff] }
  0x6a   : > { %653 = vperm.xlu2 %2172, %v350_v16   ;;  %v874_v16 = vld [vmem:[%s3620_s2 + $0x60] sm:$0xff] }
  0x6b   : > { %416 = vperm.xlu0 %2205, %v2535_v29   ;;  %2173 = vset.pattern.permute.xlu1 %v3628_v4 }
  0x6c   : > { %649 = vperm.xlu1 %2173, %v349_v30  }
  0x72   : > { %2175 = vset.pattern.permute.xlu2 %v3634_v5 }
  0x73   : > { %431 = vperm.xlu0 %2205, %v349_v30   ;;  %511 = vperm.xlu2 %2175, %v365_v33   ;;  %v2554_v36 = vpop.permute.xlu2 %391 }
  0x74   : > { %3650 = vst [vmem:[#allocation6_spill] sm:$0xff] %v2554_v36  ;;  %v2558_v37 = vmul.f32 %v2549_v34, %v2554_v36  ;;  %2174 = vset.pattern.permute.xlu1 %v3634_v5 }
  0x75   : > { %971 = vperm.xlu1 %2174, %v877_v35  }
  0x76   : > { %3651 = vst [vmem:[#allocation7_spill] sm:$0xff] %v2558_v37 }
  0x7b   : > { %446 = vperm.xlu0 %2205, %v352_v26   ;;  %2176 = vset.pattern.permute.xlu2 %v3628_v4  ;;  %v2562_v38 = vpop.permute.xlu2 %396 }
  0x7c   : > { %3652 = vst [vmem:[#allocation8_spill] sm:$0xff] %v2562_v38  ;;  %v2566_v39 = vmul.f32 %v2549_v34, %v2562_v38  ;;  %713 = vperm.xlu2 %2176, %v365_v33  }
  0x7d   : > { %516 = vperm.xlu1 %2174, %v2417_v9   ;;  %v875_v9 = vld [vmem:[%s3620_s2 + $0x68] sm:$0xff] }
  0x7e   : > { %3653 = vst [vmem:[#allocation9_spill] sm:$0xff] %v2566_v39 }
  0x83   : > { %461 = vperm.xlu0 %2205, %v2572_v40   ;;  %v2581_v43 = vpop.permute.xlu2 %411 }
  0x84   : > { %3654 = vst [vmem:[#allocation10_spill] sm:$0xff] %v2581_v43  ;;  %v2585_v45 = vmul.f32 %v2549_v34, %v2581_v43  ;;  %2177 = vset.pattern.permute.xlu2 %v3634_v5 }
  0x85   : > { %1051 = vperm.xlu2 %2177, %v893_v41   ;;  %1046 = vperm.xlu1 %2174, %v892_v42  }
  0x8a   : > { %v658_v47 = vpop.permute.xlu0 %657 }
  0x8b   : > { %476 = vperm.xlu0 %2205, %v2462_v17   ;;  %v763_v49 = vmul.f32 %v2588_v46, %v658_v47  ;;  %v2592_v50 = vpop.permute.xlu2 %426  ;;  %v2594_v51 = vpop.permute.xlu1 %381  ;;  %v762_v58 = vmul.f32 %v2606_v55, %v658_v47  ;;  %v890_v47 = vld [vmem:[%s3620_s2 + $0xe0] sm:$0xff] }
  0x8c   : > { %3655 = vst [vmem:[#allocation11_spill] sm:$0xff] %v2594_v51  ;;  %v2598_v52 = vmul.f32 %v2549_v34, %v2592_v50  ;;  %v2602_v53 = vmul.f32 %v2549_v34, %v2594_v51 }
  0x8d   : > { %2179 = vset.pattern.permute.xlu2 %v3628_v4  ;;  %2178 = vset.pattern.permute.xlu1 %v3628_v4 }
  0x8e   : > { %3656 = vst [vmem:[#allocation12_spill] sm:$0xff] %v2602_v53  ;;  %645 = vperm.xlu2 %2179, %v2440_v13   ;;  %641 = vperm.xlu1 %2178, %v2445_v14  }
  0x92   : > { %v2616_v59 = vpop.permute.xlu0 %725 }
  0x93   : > { %966 = vperm.xlu0 %2205, %v876_v56   ;;  %v2620_v60 = vmul.f32 %v2588_v46, %v2616_v59  ;;  %v442_v61 = vpop.permute.xlu2 %441  ;;  %v2622_v62 = vpop.permute.xlu1 %386 }
  0x94   : > { %3657 = vst [vmem:[#allocation13_spill] sm:$0xff] %v2622_v62  ;;  %v564_v63 = vmul.f32 %v2613_v57, %v442_v61  ;;  %v565_v0 = vmul.f32 %v2549_v34, %v442_v61  ;;  %v2628_v1 = vmul.f32 %v2549_v34, %v2622_v62 }
  0x96   : > { %3658 = vst [vmem:[#allocation14_spill] sm:$0xff] %v2628_v1  ;;  %2181 = vset.pattern.permute.xlu2 %v3634_v5  ;;  %2180 = vset.pattern.permute.xlu1 %v3634_v5  ;;  %v2638_v13 = vadd.f32 %v762_v58, %v564_v63  ;;  %v2640_v14 = vadd.f32 %v763_v49, %v565_v0  ;;  %v870_v49 = vld [vmem:[%s3620_s2 + $0x40] sm:$0xff] }
  0x97   : > { %501 = vperm.xlu2 %2181, %v363_v6   ;;  %961 = vperm.xlu1 %2180, %v875_v9  }
  0x9a   : > { %v2645_v17 = vpop.permute.xlu0 %717 }
  0x9b   : > { %956 = vperm.xlu0 %2205, %v874_v16   ;;  %v2649_v18 = vmul.f32 %v2588_v46, %v2645_v17  ;;  %v457_v25 = vpop.permute.xlu2 %456  ;;  %v2651_v26 = vpop.permute.xlu1 %406 }
  0x9c   : > { %3659 = vst [vmem:[#allocation15_spill] sm:$0xff] %v2651_v26  ;;  %v571_v30 = vmul.f32 %v2549_v34, %v457_v25  ;;  %v2656_v31 = vmul.f32 %v2549_v34, %v2651_v26 }
  0x9f   : > { %2182 = vset.pattern.permute.xlu2 %v3628_v4  ;;  %506 = vperm.xlu1 %2180, %v2435_v12  }
  0xa0   : > { %705 = vperm.xlu2 %2182, %v363_v6   ;;  %v887_v6 = vld [vmem:[%s3620_s2 + $0xc8] sm:$0xff] }
  0xa2   : > { %v2663_v33 = vpop.permute.xlu0 %709 }
  0xa3   : > { %946 = vperm.xlu0 %2205, %v872_v32   ;;  %v2667_v35 = vmul.f32 %v2588_v46, %v2663_v33  ;;  %v2669_v41 = vpop.permute.xlu2 %471  ;;  %v2671_v42 = vpop.permute.xlu1 %421 }
  0xa4   : > { %3660 = vst [vmem:[#allocation16_spill] sm:$0xff] %v2669_v41  ;;  %v2675_v44 = vmul.f32 %v2549_v34, %v2669_v41  ;;  %v2679_v12 = vmul.f32 %v2549_v34, %v2671_v42 }
  0xa6   : > { %3661 = vst [vmem:[#allocation17_spill] sm:$0xff] %v2675_v44 }
  0xa7   : > { %1036 = vperm.xlu1 %2180, %v890_v47  }
  0xa8   : > { %2183 = vset.pattern.permute.xlu2 %v3634_v5 }
  0xa9   : > { %1041 = vperm.xlu2 %2183, %v891_v48  }
  0xaa   : > { %v2691_v54 = vpop.permute.xlu0 %701 }
  0xab   : > { %3662 = vst [vmem:[#allocation18_spill] sm:$0xff] %v2691_v54  ;;  %936 = vperm.xlu0 %2205, %v870_v49   ;;  %v2695_v56 = vmul.f32 %v2588_v46, %v2691_v54  ;;  %v2697_v58 = vpop.permute.xlu2 %486  ;;  %v2699_v61 = vpop.permute.xlu1 %436  ;;  %v868_v49 = vld [vmem:[%s3620_s2 + $0x30] sm:$0xff] }
  0xac   : > { %3664 = vst [vmem:[#allocation20_spill] sm:$0xff] %v2697_v58  ;;  %v2703_v63 = vmul.f32 %v2549_v34, %v2697_v58  ;;  %v563_v0 = vmul.f32 %v2549_v34, %v2699_v61 }
  0xad   : > { %3663 = vst [vmem:[#allocation19_spill] sm:$0xff] %v2695_v56 }
  0xae   : > { %3665 = vst [vmem:[#allocation21_spill] sm:$0xff] %v2703_v63 }
  0xaf   : > { %2184 = vset.pattern.permute.xlu1 %v3628_v4 }
  0xb0   : > { %633 = vperm.xlu1 %2184, %v2422_v10  }
  0xb1   : > { %2185 = vset.pattern.permute.xlu2 %v3628_v4 }
  0xb2   : > { %637 = vperm.xlu2 %2185, %v2535_v29   ;;  %v2714_v9 = vpop.permute.xlu0 %685  ;;  %v873_v29 = vld [vmem:[%s3620_s2 + $0x58] sm:$0xff] }
  0xb3   : > { %1021 = vperm.xlu0 %2205, %v887_v6   ;;  %v2718_v16 = vmul.f32 %v2588_v46, %v2714_v9  ;;  %v2720_v32 = vpop.permute.xlu2 %521  ;;  %v2722_v47 = vpop.permute.xlu1 %451  ;;  %v361_v6 = vld [vmem:[%s3619_s1 + $0xc0] sm:$0xff] }
  0xb4   : > { %3666 = vst [vmem:[#allocation22_spill] sm:$0xff] %v2722_v47  ;;  %v597_v10 = vmul.f32 %v2549_v34, %v2720_v32  ;;  %v2728_v48 = vmul.f32 %v2549_v34, %v2722_v47  ;;  %v570_v47 = vmul.f32 %v2613_v57, %v457_v25 }
  0xb6   : > { %3667 = vst [vmem:[#allocation23_spill] sm:$0xff] %v2728_v48 }
  0xb8   : > { %2186 = vset.pattern.permute.xlu1 %v3634_v5 }
  0xb9   : > { %951 = vperm.xlu1 %2186, %v873_v29  }
  0xba   : > { %2187 = vset.pattern.permute.xlu2 %v3634_v5  ;;  %v670_v4 = vpop.permute.xlu0 %669 }
  0xbb   : > { %926 = vperm.xlu0 %2205, %v868_v49   ;;  %v768_v62 = vmul.f32 %v2606_v55, %v670_v4  ;;  %v769_v51 = vmul.f32 %v2588_v46, %v670_v4  ;;  %491 = vperm.xlu2 %2187, %v361_v6   ;;  %v2744_v48 = vpop.permute.xlu1 %466  ;;  %v866_v4 = vld [vmem:[%s3620_s2 + $0x20] sm:$0xff] }
  0xbc   : > { %3668 = vst [vmem:[#allocation24_spill] sm:$0xff] %v2744_v48  ;;  %v2748_v38 = vmul.f32 %v2549_v34, %v2744_v48  ;;  %v2750_v53 = vpop.permute.xlu2 %721  ;;  %v3672_v48 = vmov 1  }
  0xbd   : > { %v795_v29 = vmul.f32 %v2588_v46, %v2750_v53  ;;  %v2754_v5 = vadd.f32 %v768_v62, %v570_v47  ;;  %v2756_v25 = vadd.f32 %v769_v51, %v571_v30  ;;  %v888_v47 = vld [vmem:[%s3620_s2 + $0xd0] sm:$0xff] }
  0xbe   : > { %3669 = vst [vmem:[#allocation25_spill] sm:$0xff] %v2748_v38 }
  0xbf   : > { %3670 = vst [vmem:[#allocation26_spill] sm:$0xff] %v2754_v5  ;;  %v2758_v49 = vadd.f32 %v795_v29, %v597_v10  ;;  %v889_v29 = vld [vmem:[%s3620_s2 + $0xd8] sm:$0xff] }
  0xc0   : > { %3671 = vst [vmem:[#allocation27_spill] sm:$0xff] %v2756_v25 }
  0xc1   : > { %496 = vperm.xlu1 %2186, %v2453_v15  }
  0xc3   : > { %916 = vperm.xlu0 %2205, %v866_v4   ;;  %2188 = vset.pattern.permute.xlu2 %v3672_v48  ;;  %v2765_v38 = vpop.permute.xlu1 %481  ;;  %v3677_v4 = vmov 0  }
  0xc4   : > { %3673 = vst [vmem:[#allocation28_spill] sm:$0xff] %v2765_v38  ;;  %v2769_v36 = vmul.f32 %v2549_v34, %v2765_v38  ;;  %697 = vperm.xlu2 %2188, %v361_v6   ;;  %v2771_v51 = vpop.permute.xlu2 %653  ;;  %v2773_v62 = vpop.permute.xlu0 %371  ;;  %v883_v6 = vld [vmem:[%s3620_s2 + $0xa8] sm:$0xff] }
  0xc5   : > { %3675 = vst [vmem:[#allocation30_spill] sm:$0xff] %v2773_v62  ;;  %v761_v30 = vmul.f32 %v2588_v46, %v2771_v51  ;;  %v2779_v15 = vmul.f32 %v2549_v34, %v2773_v62 }
  0xc6   : > { %3674 = vst [vmem:[#allocation29_spill] sm:$0xff] %v2769_v36 }
  0xc7   : > { %3676 = vst [vmem:[#allocation31_spill] sm:$0xff] %v2779_v15  ;;  %v2784_v10 = vadd.f32 %v761_v30, %v563_v0 }
  0xc9   : > { %1026 = vperm.xlu1 %2186, %v888_v47  }
  0xcb   : > { %1001 = vperm.xlu0 %2205, %v883_v6   ;;  %v864_v6 = vld [vmem:[%s3620_s2 + $0x10] sm:$0xff] }
  0xcc   : > { %2189 = vset.pattern.permute.xlu2 %v3677_v4  ;;  %v2793_v25 = vpop.permute.xlu1 %661  ;;  %v2795_v5 = vpop.permute.xlu0 %376 }
  0xcd   : > { %3678 = vst [vmem:[#allocation32_spill] sm:$0xff] %v2795_v5  ;;  %v765_v0 = vmul.f32 %v2588_v46, %v2793_v25  ;;  %v2801_v30 = vmul.f32 %v2549_v34, %v2795_v5  ;;  %1031 = vperm.xlu2 %2189, %v889_v29   ;;  %v2803_v47 = vpop.permute.xlu2 %511 }
  0xce   : > { %v593_v62 = vmul.f32 %v2549_v34, %v2803_v47 }
  0xcf   : > { %3679 = vst [vmem:[#allocation33_spill] sm:$0xff] %v2801_v30 }
  0xd1   : > { %2190 = vset.pattern.permute.xlu1 %v3672_v48 }
  0xd2   : > { %625 = vperm.xlu1 %2190, %v2526_v28   ;;  %v878_v28 = vld [vmem:[%s3620_s2 + $0x80] sm:$0xff] }
  0xd3   : > { %906 = vperm.xlu0 %2205, %v864_v6   ;;  %v871_v6 = vld [vmem:[%s3620_s2 + $0x48] sm:$0xff] }
  0xd5   : > { %v2812_v15 = vpop.permute.xlu0 %401  ;;  %2191 = vset.pattern.permute.xlu2 %v3672_v48  ;;  %v527_v5 = vpop.permute.xlu1 %526 }
  0xd6   : > { %3680 = vst [vmem:[#allocation34_spill] sm:$0xff] %v2812_v15  ;;  %v2817_v29 = vmul.f32 %v2549_v34, %v2812_v15  ;;  %v599_v30 = vmul.f32 %v2549_v34, %v527_v5  ;;  %629 = vperm.xlu2 %2191, %v2427_v11   ;;  %v2821_v41 = vpop.permute.xlu2 %713 }
  0xd7   : > { %v791_v38 = vmul.f32 %v2588_v46, %v2821_v41 }
  0xd8   : > { %3681 = vst [vmem:[#allocation35_spill] sm:$0xff] %v2817_v29  ;;  %v861_v58 = vadd.f32 %v2620_v60, %v599_v30 }
  0xd9   : > { %v2832_v1 = vadd.f32 %v791_v38, %v593_v62  ;;  %v1243_v62 = vld [vmem:[%s3622_s4 + $0x68] sm:$0xff] }
  0xda   : > { %2192 = vset.pattern.permute.xlu1 %v3677_v4 }
  0xdb   : > { %976 = vperm.xlu0 %2205, %v878_v28   ;;  %941 = vperm.xlu1 %2192, %v871_v6  }
  0xdd   : > { %v2835_v11 = vpop.permute.xlu0 %416 }
  0xde   : > { %3682 = vst [vmem:[#allocation36_spill] sm:$0xff] %v2835_v11  ;;  %v2839_v26 = vmul.f32 %v2549_v34, %v2835_v11  ;;  %689 = vperm.xlu2 %2191, %v2494_v23   ;;  %v2842_v37 = vpop.permute.xlu1 %649  ;;  %v886_v23 = vld [vmem:[%s3620_s2 + $0xc0] sm:$0xff] }
  0xdf   : > { %v759_v15 = vmul.f32 %v2588_v46, %v2842_v37  ;;  %v1052_v60 = vpop.permute.xlu2 %1051 }
  0xe0   : > { %v1117_v38 = vadd.f32 %v1052_v60, %v861_v58 }
  0xe3   : > { %1313 = vperm.xlu0 %2205, %v1243_v62   ;;  %2193 = vset.pattern.permute.xlu1 %v3672_v48 }
  0xe4   : > { %693 = vperm.xlu1 %2193, %v2489_v22   ;;  %v1238_v22 = vld [vmem:[%s3622_s4 + $0x40] sm:$0xff] }
  0xe5   : > { %v2854_v30 = vpop.permute.xlu0 %431 }
  0xe6   : > { %v561_v28 = vmul.f32 %v2549_v34, %v2854_v30  ;;  %2194 = vset.pattern.permute.xlu2 %v3677_v4 }
  0xe7   : > { %1016 = vperm.xlu2 %2194, %v886_v23   ;;  %v2859_v58 = vpop.permute.xlu1 %971 }
  0xe8   : > { %v2861_v6 = vpop.permute.xlu2 %645  ;;  %v2866_v62 = vadd.f32 %v759_v15, %v561_v28  ;;  %v796_v15 = vmul.f32 %v2606_v55, %v2616_v59  ;;  %v598_v28 = vmul.f32 %v2613_v57, %v527_v5  ;;  %v869_v5 = vld [vmem:[%s3620_s2 + $0x38] sm:$0xff] }
  0xe9   : > { %v757_v63 = vmul.f32 %v2588_v46, %v2861_v6 }
  0xea   : > { %v860_v43 = vadd.f32 %v796_v15, %v598_v28  ;;  %v1181_v28 = vmax.f32 %v1117_v38, 0.0 }
  0xeb   : > { %1288 = vperm.xlu0 %2205, %v1238_v22   ;;  %v2871_v44 = vadd.f32 %v757_v63, %v2598_v52  ;;  %v794_v63 = vmul.f32 %v2606_v55, %v2750_v53 }
  0xec   : > { %617 = vperm.xlu1 %2193, %v2387_v2   ;;  %v1237_v2 = vld [vmem:[%s3622_s4 + $0x38] sm:$0xff]  ;;  %v1116_v36 = vadd.f32 %v1052_v60, %v860_v43  ;;  %v884_v60 = vld [vmem:[%s3620_s2 + $0xb0] sm:$0xff] }
  0xed   : > { %v447_v23 = vpop.permute.xlu0 %446 }
  0xee   : > { %v567_v39 = vmul.f32 %v2549_v34, %v447_v23  ;;  %v1180_v15 = vmax.f32 %v1116_v36, 0.0  ;;  %v776_v36 = vmul.f32 %v2606_v55, %v2714_v9 }
  0xef   : > { %2195 = vset.pattern.permute.xlu2 %v3672_v48  ;;  %v2876_v11 = vpop.permute.xlu1 %516 }
  0xf0   : > { %v829_v29 = vadd.f32 %v765_v0, %v567_v39  ;;  %v595_v22 = vmul.f32 %v2549_v34, %v2876_v11  ;;  %621 = vperm.xlu2 %2195, %v2405_v7   ;;  %v596_v0 = vmul.f32 %v2613_v57, %v2720_v32  ;;  %v1232_v32 = vld [vmem:[%s3622_s4 + $0x10] sm:$0xff] }
  0xf1   : > { %v2887_v52 = vpop.permute.xlu2 %501 }
  0xf2   : > { %v589_v59 = vmul.f32 %v2549_v34, %v2887_v52  ;;  %v857_v39 = vadd.f32 %v2649_v18, %v595_v22  ;;  %v2898_v7 = vadd.f32 %v2859_v58, %v829_v29  ;;  %v858_v56 = vadd.f32 %v794_v63, %v596_v0 }
  0xf3   : > { %1283 = vperm.xlu0 %2205, %v1237_v2  }
  0xf4   : > { %2196 = vset.pattern.permute.xlu1 %v3677_v4 }
  0xf5   : > { %v2903_v53 = vpop.permute.xlu0 %461  ;;  %931 = vperm.xlu1 %2196, %v869_v5  }
  0xf6   : > { %v2907_v54 = vmul.f32 %v2549_v34, %v2903_v53 }
  0xf7   : > { %v1047_v18 = vpop.permute.xlu1 %1046 }
  0xf8   : > { %v1114_v22 = vadd.f32 %v1047_v18, %v858_v56  ;;  %v1115_v29 = vadd.f32 %v1047_v18, %v2758_v49  ;;  %681 = vperm.xlu2 %2195, %v2477_v20   ;;  %v566_v20 = vmul.f32 %v2613_v57, %v447_v23  ;;  %v764_v18 = vmul.f32 %v2606_v55, %v2793_v25  ;;  %v885_v23 = vld [vmem:[%s3620_s2 + $0xb8] sm:$0xff] }
  0xfa   : > { %v1178_v2 = vmax.f32 %v1114_v22, 0.0  ;;  %v1179_v5 = vmax.f32 %v1115_v29, 0.0  ;;  %v2914_v43 = vpop.permute.xlu2 %705 }
  0xfb   : > { %1258 = vperm.xlu0 %2205, %v1232_v32   ;;  %v787_v56 = vmul.f32 %v2588_v46, %v2914_v43  ;;  %v828_v32 = vadd.f32 %v764_v18, %v566_v20  ;;  %v760_v20 = vmul.f32 %v2606_v55, %v2771_v51  ;;  %v1660_v51 = vld [vmem:[%s3624_s6 + $0x10] sm:$0xff] }
  0xfc   : > { %v1228_v49 = vpack.c.bf16 %v1180_v15, %v1178_v2  ;;  %v2922_v63 = vpack.c.bf16 %v1181_v28, %v1179_v5 }
  0xfd   : > { %v477_v38 = vpop.permute.xlu0 %476  ;;  %1006 = vperm.xlu1 %2196, %v884_v60   ;;  %v2926_v0 = vadd.f32 %v787_v56, %v589_v59  ;;  %v1231_v59 = vld [vmem:[%s3622_s4 + $0x8] sm:$0xff]  ;;  %v1084_v56 = vadd.f32 %v2859_v58, %v828_v32 }
  0xfe   : > { %v578_v22 = vmul.f32 %v2613_v57, %v477_v38  ;;  %v579_v29 = vmul.f32 %v2549_v34, %v477_v38  ;;  %1455 = vmatpush.bf16.msra.mxu1 %v1228_v49  ;;  %2118 = vmatpush.bf16.msra.mxu3 %v1228_v49 }
  0xff   : > { %v1148_v18 = vmax.f32 %v1084_v56, 0.0 }
 0x100   : > { %2197 = vset.pattern.permute.xlu2 %v3677_v4  ;;  %v2936_v9 = vpop.permute.xlu1 %641  ;;  %v2941_v25 = vadd.f32 %v776_v36, %v578_v22  ;;  %v2944_v15 = vadd.f32 %v2718_v16, %v579_v29  ;;  %v1149_v22 = vmax.f32 %v2898_v7, 0.0 }
 0x101   : > { %v755_v28 = vmul.f32 %v2588_v46, %v2936_v9  ;;  %1011 = vperm.xlu2 %2197, %v885_v23  }
 0x103   : > { %1253 = vperm.xlu0 %2205, %v1231_v59   ;;  %v2948_v2 = vpop.permute.xlu2 %1041  ;;  %v819_v5 = vadd.f32 %v755_v28, %v2679_v12  ;;  %v562_v12 = vmul.f32 %v2613_v57, %v2699_v61  ;;  %v867_v59 = vld [vmem:[%s3620_s2 + $0x28] sm:$0xff] }
 0x104   : > { %v2952_v60 = vadd.f32 %v2948_v2, %v857_v39  ;;  %v560_v39 = vmul.f32 %v2613_v57, %v2854_v30 }
 0x105   : > { %v967_v49 = vpop.permute.xlu0 %966  ;;  %2198 = vset.pattern.permute.xlu1 %v3672_v48 }
 0x106   : > { %v1082_v16 = vadd.f32 %v967_v49, %v2638_v13  ;;  %v1083_v36 = vadd.f32 %v967_v49, %v2640_v14  ;;  %609 = vperm.xlu1 %2198, %v2392_v3   ;;  %v824_v14 = vadd.f32 %v760_v20, %v562_v12  ;;  %v758_v3 = vmul.f32 %v2606_v55, %v2842_v37  ;;  %v1805_v12 = vld [vmem:[%s3625_s7 + $0x8] sm:$0xff] }
 0x108   : > { %v1146_v38 = vmax.f32 %v1082_v16, 0.0  ;;  %v1147_v58 = vmax.f32 %v1083_v36, 0.0  ;;  %v822_v32 = vadd.f32 %v758_v3, %v560_v39  ;;  %v792_v39 = vmul.f32 %v2606_v55, %v2645_v17 }
 0x109   : > { %2199 = vset.pattern.permute.xlu2 %v3672_v48  ;;  %v962_v13 = vpop.permute.xlu1 %961  ;;  %v790_v17 = vmul.f32 %v2606_v55, %v2821_v41 }
 0x10a   : > { %v1081_v61 = vadd.f32 %v962_v13, %v2784_v10  ;;  %613 = vperm.xlu2 %2199, %v2410_v8   ;;  %v1212_v30 = vpack.c.bf16 %v1148_v18, %v1146_v38  ;;  %v2974_v29 = vpack.c.bf16 %v1149_v22, %v1147_v58  ;;  %v1080_v23 = vadd.f32 %v962_v13, %v824_v14 }
 0x10b   : > { %1678 = vperm.xlu0 %2205, %v1660_v51   ;;  %v592_v18 = vmul.f32 %v2613_v57, %v2803_v47 }
 0x10c   : > { %1406 = vmatpush.bf16.msra.mxu0 %v1212_v30  ;;  %2110 = vmatpush.bf16.msra.mxu2 %v1212_v30  ;;  %v2976_v7 = vpop.permute.xlu2 %637  ;;  %v1144_v20 = vmax.f32 %v1080_v23, 0.0  ;;  %v1145_v49 = vmax.f32 %v1081_v61, 0.0  ;;  %v882_v61 = vld [vmem:[%s3620_s2 + $0xa0] sm:$0xff] }
 0x10d   : > { %v957_v28 = vpop.permute.xlu0 %956  ;;  %v753_v37 = vmul.f32 %v2588_v46, %v2976_v7  ;;  %v854_v41 = vadd.f32 %v790_v17, %v592_v18 }
 0x10e   : > { %v1078_v10 = vadd.f32 %v957_v28, %v822_v32  ;;  %v1079_v8 = vadd.f32 %v957_v28, %v2866_v62  ;;  %2200 = vset.pattern.permute.xlu1 %v3677_v4  ;;  %v594_v62 = vmul.f32 %v2613_v57, %v2876_v11 }
 0x10f   : > { %921 = vperm.xlu1 %2200, %v867_v59   ;;  %v2986_v56 = vadd.f32 %v753_v37, %v2839_v26 }
 0x110   : > { %v1142_v16 = vmax.f32 %v1078_v10, 0.0  ;;  %v1143_v36 = vmax.f32 %v1079_v8, 0.0  ;;  %v856_v14 = vadd.f32 %v792_v39, %v594_v62  ;;  %v556_v39 = vmul.f32 %v2613_v57, %v2671_v42  ;;  %v1810_v42 = vld [vmem:[%s3625_s7 + $0x30] sm:$0xff] }
 0x111   : > { %v2993_v38 = vpop.permute.xlu1 %506  ;;  %v756_v62 = vmul.f32 %v2606_v55, %v2861_v6 }
 0x112   : > { %v591_v26 = vmul.f32 %v2549_v34, %v2993_v38  ;;  %673 = vperm.xlu2 %2199, %v2572_v40   ;;  %v1210_v58 = vpack.c.bf16 %v1144_v20, %v1142_v16  ;;  %v3000_v51 = vpack.c.bf16 %v1145_v49, %v1143_v36  ;;  %v1112_v47 = vadd.f32 %v2948_v2, %v856_v14 }
 0x113   : > { %1819 = vperm.xlu0 %2205, %v1805_v12   ;;  %v754_v36 = vmul.f32 %v2606_v55, %v2936_v9 }
 0x114   : > { %1407 = vmatpush.bf16.msra.mxu0 %v1210_v58  ;;  %2111 = vmatpush.bf16.msra.mxu2 %v1210_v58  ;;  %v853_v22 = vadd.f32 %v2667_v35, %v591_v26  ;;  %v1663_v35 = vld [vmem:[%s3624_s6 + $0x28] sm:$0xff]  ;;  %v1176_v2 = vmax.f32 %v1112_v47, 0.0  ;;  %v865_v26 = vld [vmem:[%s3620_s2 + $0x18] sm:$0xff] }
 0x115   : > { %v947_v11 = vpop.permute.xlu0 %946  ;;  %v3007_v13 = vpop.permute.xlu2 %491 }
 0x116   : > { %v3009_v3 = vadd.f32 %v947_v11, %v819_v5  ;;  %v585_v40 = vmul.f32 %v2549_v34, %v3007_v13 }
 0x117   : > { %2201 = vset.pattern.permute.xlu1 %v3672_v48 }
 0x118   : > { %677 = vperm.xlu1 %2201, %v2482_v21   ;;  %v1177_v21 = vmax.f32 %v2952_v60, 0.0  ;;  %v1139_v47 = vmax.f32 %v3009_v3, 0.0  ;;  %v590_v3 = vmul.f32 %v2613_v57, %v2993_v38  ;;  %v786_v38 = vmul.f32 %v2606_v55, %v2914_v43 }
 0x119   : > { %v1037_v5 = vpop.permute.xlu1 %1036 }
 0x11a   : > { %v1110_v30 = vadd.f32 %v1037_v5, %v854_v41  ;;  %v1111_v23 = vadd.f32 %v1037_v5, %v2832_v1  ;;  %2202 = vset.pattern.permute.xlu2 %v3677_v4  ;;  %v1808_v1 = vld [vmem:[%s3625_s7 + $0x20] sm:$0xff] }
 0x11b   : > { %1693 = vperm.xlu0 %2205, %v1663_v35   ;;  %996 = vperm.xlu2 %2202, %v882_v61   ;;  %v880_v61 = vld [vmem:[%s3620_s2 + $0x90] sm:$0xff] }
 0x11c   : > { %v1174_v32 = vmax.f32 %v1110_v30, 0.0  ;;  %v1175_v59 = vmax.f32 %v1111_v23, 0.0 }
 0x11d   : > { %v3025_v28 = vpop.permute.xlu0 %936 }
 0x11e   : > { %v3027_v37 = vpop.permute.xlu2 %697  ;;  %v1226_v10 = vpack.c.bf16 %v1176_v2, %v1174_v32  ;;  %v3029_v8 = vpack.c.bf16 %v1177_v21, %v1175_v59  ;;  %v788_v32 = vmul.f32 %v2606_v55, %v2663_v33 }
 0x11f   : > { %v783_v20 = vmul.f32 %v2588_v46, %v3027_v37 }
 0x120   : > { %601 = vperm.xlu1 %2201, %v2499_v24   ;;  %1456 = vmatpush.bf16.msra.mxu1 %v1226_v10 }
 0x121   : > { %2119 = vmatpush.bf16.msra.mxu3 %v1226_v10  ;;  %v3037_v60 = vadd.f32 %v783_v20, %v585_v40  ;;  %v588_v10 = vmul.f32 %v2613_v57, %v2887_v52  ;;  %v3683_v20 = vld [vmem:[#allocation19_spill] sm:$0xff] }
 0x122   : > { %v3039_v49 = vpop.permute.xlu1 %633 }
 0x123   : > { %v751_v16 = vmul.f32 %v2588_v46, %v3039_v49  ;;  %1834 = vperm.xlu0 %2205, %v1808_v1   ;;  %2203 = vset.pattern.permute.xlu2 %v3672_v48 }
 0x124   : > { %605 = vperm.xlu2 %2203, %v2514_v27   ;;  %v558_v27 = vmul.f32 %v2613_v57, %v2592_v50 }
 0x125   : > { %v815_v24 = vadd.f32 %v751_v16, %v2585_v45  ;;  %v3048_v12 = vpop.permute.xlu0 %1021  ;;  %v818_v45 = vadd.f32 %v754_v36, %v556_v39  ;;  %v850_v39 = vadd.f32 %v786_v38, %v588_v10 }
 0x126   : > { %v820_v18 = vadd.f32 %v756_v62, %v558_v27  ;;  %v863_v62 = vld [vmem:[%s3620_s2 + $0x8] sm:$0xff] }
 0x127   : > { %v1032_v48 = vpop.permute.xlu2 %1031  ;;  %v3058_v58 = vadd.f32 %v3025_v28, %v815_v24  ;;  %v1074_v6 = vadd.f32 %v947_v11, %v818_v45  ;;  %v3684_v24 = vld [vmem:[#allocation18_spill] sm:$0xff]  ;;  %v3685_v45 = vld [vmem:[#allocation29_spill] sm:$0xff] }
 0x128   : > { %v3062_v9 = vadd.f32 %v1032_v48, %v853_v22  ;;  %2204 = vset.pattern.permute.xlu1 %v3677_v4  ;;  %v784_v43 = vmul.f32 %v2606_v55, %v3684_v24 }
 0x129   : > { %911 = vperm.xlu1 %2204, %v865_v26   ;;  %v1138_v22 = vmax.f32 %v1074_v6, 0.0  ;;  %v584_v26 = vmul.f32 %v2613_v57, %v3007_v13 }
 0x12b   : > { %1844 = vperm.xlu0 %2205, %v1810_v42   ;;  %v952_v17 = vpop.permute.xlu1 %951 }
 0x12c   : > { %v1076_v14 = vadd.f32 %v952_v17, %v820_v18  ;;  %v1077_v40 = vadd.f32 %v952_v17, %v2871_v44  ;;  %665 = vperm.xlu2 %2203, %v2470_v19   ;;  %v881_v19 = vld [vmem:[%s3620_s2 + $0x98] sm:$0xff] }
 0x12d   : > { %v3070_v50 = vpop.permute.xlu0 %926 }
 0x12e   : > { %v1140_v41 = vmax.f32 %v1076_v14, 0.0  ;;  %v1141_v35 = vmax.f32 %v1077_v40, 0.0 }
 0x130   : > { %v3076_v11 = vpop.permute.xlu2 %629  ;;  %v1208_v5 = vpack.c.bf16 %v1140_v41, %v1138_v22  ;;  %v3078_v30 = vpack.c.bf16 %v1141_v35, %v1139_v47  ;;  %v1173_v22 = vmax.f32 %v3062_v9, 0.0 }
 0x131   : > { %v749_v44 = vmul.f32 %v2588_v46, %v3076_v11  ;;  %986 = vperm.xlu1 %2204, %v880_v61  }
 0x132   : > { %1408 = vmatpush.bf16.msra.mxu0 %v1208_v5  ;;  %2112 = vmatpush.bf16.msra.mxu2 %v1208_v5 }
 0x133   : > { %v497_v23 = vpop.permute.xlu1 %496  ;;  %v3088_v2 = vadd.f32 %v749_v44, %v2656_v31  ;;  %v852_v31 = vadd.f32 %v788_v32, %v590_v3  ;;  %v750_v3 = vmul.f32 %v2606_v55, %v3039_v49 }
 0x134   : > { %v587_v21 = vmul.f32 %v2549_v34, %v497_v23  ;;  %2206 = vset.pattern.permute.xlu2 %v3677_v4  ;;  %v862_v34 = vld [vmem:[%s3620_s2] sm:$0xff]  ;;  %v586_v4 = vmul.f32 %v2613_v57, %v497_v23 }
 0x135   : > { %v3094_v59 = vpop.permute.xlu0 %916  ;;  %991 = vperm.xlu2 %2206, %v881_v19   ;;  %v1108_v36 = vadd.f32 %v1032_v48, %v852_v31  ;;  %v782_v48 = vmul.f32 %v2606_v55, %v3027_v37  ;;  %v879_v37 = vld [vmem:[%s3620_s2 + $0x88] sm:$0xff] }
 0x136   : > { %v849_v1 = vadd.f32 %v3683_v20, %v587_v21  ;;  %v848_v6 = vadd.f32 %v784_v43, %v586_v4  ;;  %v3686_v20 = vld [vmem:[#allocation10_spill] sm:$0xff]  ;;  %v3687_v4 = vld [vmem:[#allocation35_spill] sm:$0xff] }
 0x137   : > { %v1172_v14 = vmax.f32 %v1108_v36, 0.0  ;;  %v846_v35 = vadd.f32 %v782_v48, %v584_v26  ;;  %v3688_v36 = vld [vmem:[#allocation36_spill] sm:$0xff]  ;;  %v3689_v48 = vld [vmem:[#allocation9_spill] sm:$0xff] }
 0x138   : > { %v3105_v16 = vpop.permute.xlu2 %689  ;;  %v1105_v33 = vadd.f32 %v3048_v12, %v849_v1 }
 0x139   : > { %v779_v52 = vmul.f32 %v2588_v46, %v3105_v16  ;;  %896 = vperm.xlu1 %2204, %v862_v34   ;;  %v1245_v34 = vld [vmem:[%s3622_s4 + $0x78] sm:$0xff] }
 0x13a   : > { %v1169_v10 = vmax.f32 %v1105_v33, 0.0  ;;  %v752_v33 = vmul.f32 %v2606_v55, %v2976_v7 }
 0x13b   : > { %v1027_v27 = vpop.permute.xlu1 %1026  ;;  %v3118_v42 = vadd.f32 %v779_v52, %v3685_v45  ;;  %v554_v52 = vmul.f32 %v2613_v57, %v3688_v36  ;;  %v3693_v36 = vld [vmem:[#allocation7_spill] sm:$0xff] }
 0x13c   : > { %v1106_v18 = vadd.f32 %v1027_v27, %v850_v39  ;;  %v1107_v17 = vadd.f32 %v1027_v27, %v2926_v0  ;;  %v1104_v0 = vadd.f32 %v3048_v12, %v848_v6 }
 0x13d   : > { %v3123_v40 = vpop.permute.xlu0 %1001  ;;  %901 = vperm.xlu2 %2206, %v863_v62   ;;  %v1242_v62 = vld [vmem:[%s3622_s4 + $0x60] sm:$0xff]  ;;  %v816_v27 = vadd.f32 %v752_v33, %v554_v52  ;;  %v1235_v33 = vld [vmem:[%s3622_s4 + $0x28] sm:$0xff] }
 0x13e   : > { %v1170_v47 = vmax.f32 %v1106_v18, 0.0  ;;  %v1171_v41 = vmax.f32 %v1107_v17, 0.0  ;;  %v3128_v13 = vadd.f32 %v3123_v40, %v2944_v15  ;;  %v1244_v15 = vld [vmem:[%s3622_s4 + $0x70] sm:$0xff]  ;;  %v1168_v12 = vmax.f32 %v1104_v0, 0.0 }
 0x140   : > { %v1224_v61 = vpack.c.bf16 %v1172_v14, %v1170_v47  ;;  %v3134_v5 = vpack.c.bf16 %v1173_v22, %v1171_v41  ;;  %v1240_v14 = vld [vmem:[%s3622_s4 + $0x50] sm:$0xff] }
 0x141   : > { %v1017_v44 = vpop.permute.xlu2 %1016  ;;  %981 = vperm.xlu1 %2204, %v879_v37   ;;  %v1135_v37 = vmax.f32 %v3058_v58, 0.0 }
 0x142   : > { %v1102_v19 = vadd.f32 %v1017_v44, %v846_v35  ;;  %v1103_v9 = vadd.f32 %v1017_v44, %v3037_v60  ;;  %1457 = vmatpush.bf16.msra.mxu1 %v1224_v61  ;;  %2120 = vmatpush.bf16.msra.mxu3 %v1224_v61  ;;  %v552_v60 = vmul.f32 %v2613_v57, %v3686_v20  ;;  %v1241_v61 = vld [vmem:[%s3622_s4 + $0x58] sm:$0xff] }
 0x143   : > { %v3690_v44 = vld [vmem:[#allocation17_spill] sm:$0xff] }
 0x144   : > { %v1166_v23 = vmax.f32 %v1102_v19, 0.0  ;;  %v1167_v21 = vmax.f32 %v1103_v9, 0.0  ;;  %v626_v32 = vpop.permute.xlu1 %625  ;;  %v814_v24 = vadd.f32 %v750_v3, %v552_v60  ;;  %v1239_v9 = vld [vmem:[%s3622_s4 + $0x48] sm:$0xff]  ;;  %v3691_v3 = vld [vmem:[#allocation21_spill] sm:$0xff] }
 0x145   : > { %v747_v38 = vmul.f32 %v2588_v46, %v626_v32  ;;  %1318 = vperm.xlu2 %2206, %v1244_v15   ;;  %v1234_v60 = vld [vmem:[%s3622_s4 + $0x20] sm:$0xff] }
 0x146   : > { %v1222_v1 = vpack.c.bf16 %v1168_v12, %v1166_v23  ;;  %v3148_v31 = vpack.c.bf16 %v1169_v10, %v1167_v21  ;;  %v1070_v45 = vadd.f32 %v3025_v28, %v814_v24  ;;  %v1236_v21 = vld [vmem:[%s3622_s4 + $0x30] sm:$0xff] }
 0x147   : > { %v811_v49 = vadd.f32 %v747_v38, %v3687_v4  ;;  %v746_v38 = vmul.f32 %v2606_v55, %v626_v32  ;;  %v748_v32 = vmul.f32 %v2606_v55, %v3076_v11 }
 0x148   : > { %1458 = vmatpush.bf16.msra.mxu1 %v1222_v1  ;;  %2121 = vmatpush.bf16.msra.mxu3 %v1222_v1  ;;  %v1134_v41 = vmax.f32 %v1070_v45, 0.0  ;;  %v3692_v1 = vld [vmem:[#allocation34_spill] sm:$0xff] }
 0x149   : > { %1323 = vperm.xlu1 %2204, %v1245_v34   ;;  %v3156_v43 = vadd.f32 %v3070_v50, %v811_v49  ;;  %v548_v34 = vmul.f32 %v2613_v57, %v3692_v1 }
 0x14a   : > { %v3158_v39 = vpop.permute.xlu2 %621 }
 0x14b   : > { %v745_v26 = vmul.f32 %v2588_v46, %v3158_v39  ;;  %v810_v49 = vadd.f32 %v746_v38, %v548_v34 }
 0x14d   : > { %v942_v7 = vpop.permute.xlu1 %941  ;;  %1308 = vperm.xlu2 %2206, %v1242_v62   ;;  %v3167_v6 = vadd.f32 %v745_v26, %v3689_v48  ;;  %v3694_v62 = vld [vmem:[#allocation15_spill] sm:$0xff] }
 0x14e   : > { %v1072_v18 = vadd.f32 %v942_v7, %v816_v27  ;;  %v1073_v17 = vadd.f32 %v942_v7, %v2986_v56  ;;  %v550_v26 = vmul.f32 %v2613_v57, %v3694_v62  ;;  %v1066_v7 = vadd.f32 %v3070_v50, %v810_v49 }
 0x14f   : > { %v778_v50 = vmul.f32 %v2606_v55, %v3105_v16 }
 0x150   : > { %v1136_v22 = vmax.f32 %v1072_v18, 0.0  ;;  %v1137_v47 = vmax.f32 %v1073_v17, 0.0  ;;  %v812_v48 = vadd.f32 %v748_v32, %v550_v26  ;;  %v1233_v18 = vld [vmem:[%s3622_s4 + $0x18] sm:$0xff] }
 0x151   : > { %1298 = vperm.xlu1 %2204, %v1240_v14   ;;  %v3695_v14 = vld [vmem:[#allocation14_spill] sm:$0xff]  ;;  %v3698_v32 = vld [vmem:[#allocation16_spill] sm:$0xff] }
 0x152   : > { %v3174_v35 = vpop.permute.xlu2 %681  ;;  %v1206_v28 = vpack.c.bf16 %v1136_v22, %v1134_v41  ;;  %v3179_v0 = vpack.c.bf16 %v1137_v47, %v1135_v37  ;;  %v3696_v47 = vld [vmem:[#allocation20_spill] sm:$0xff] }
 0x153   : > { %v775_v56 = vmul.f32 %v2588_v46, %v3174_v35  ;;  %v582_v41 = vmul.f32 %v2613_v57, %v3696_v47  ;;  %v774_v49 = vmul.f32 %v2606_v55, %v3174_v35  ;;  %v1161_v47 = vmax.f32 %v3128_v13, 0.0  ;;  %v3700_v13 = vld [vmem:[#allocation12_spill] sm:$0xff] }
 0x154   : > { %1409 = vmatpush.bf16.msra.mxu0 %v1206_v28  ;;  %2113 = vmatpush.bf16.msra.mxu2 %v1206_v28 }
 0x155   : > { %1303 = vperm.xlu2 %2206, %v1241_v61   ;;  %v3184_v19 = vadd.f32 %v775_v56, %v3690_v44  ;;  %v1130_v61 = vmax.f32 %v1066_v7, 0.0  ;;  %v1659_v7 = vld [vmem:[%s3624_s6 + $0x8] sm:$0xff] }
 0x156   : > { %v694_v58 = vpop.permute.xlu1 %693 }
 0x157   : > { %v781_v15 = vmul.f32 %v2588_v46, %v694_v58  ;;  %v780_v11 = vmul.f32 %v2606_v55, %v694_v58 }
 0x159   : > { %1293 = vperm.xlu1 %2204, %v1239_v9   ;;  %v845_v23 = vadd.f32 %v781_v15, %v3691_v3  ;;  %v844_v56 = vadd.f32 %v780_v11, %v582_v41  ;;  %v1230_v9 = vld [vmem:[%s3622_s4] sm:$0xff]  ;;  %v1131_v15 = vmax.f32 %v3156_v43, 0.0  ;;  %v3697_v3 = vld [vmem:[#allocation28_spill] sm:$0xff] }
 0x15a   : > { %v1658_v43 = vld [vmem:[%s3624_s6] sm:$0xff] }
 0x15b   : > { %v1012_v12 = vpop.permute.xlu2 %1011 }
 0x15c   : > { %v1101_v10 = vadd.f32 %v1012_v12, %v845_v23  ;;  %v580_v23 = vmul.f32 %v2613_v57, %v3697_v3 }
 0x15d   : > { %1278 = vperm.xlu2 %2206, %v1236_v21  }
 0x15e   : > { %v3195_v20 = vpop.permute.xlu1 %617  ;;  %v842_v1 = vadd.f32 %v778_v50, %v580_v23  ;;  %v1165_v62 = vmax.f32 %v1101_v10, 0.0  ;;  %v1661_v10 = vld [vmem:[%s3624_s6 + $0x18] sm:$0xff]  ;;  %v3699_v50 = vld [vmem:[#allocation6_spill] sm:$0xff] }
 0x15f   : > { %v743_v4 = vmul.f32 %v2588_v46, %v3195_v20 }
 0x161   : > { %v807_v52 = vadd.f32 %v743_v4, %v3693_v36  ;;  %1268 = vperm.xlu1 %2204, %v1234_v60   ;;  %v1100_v60 = vadd.f32 %v1012_v12, %v844_v56  ;;  %v576_v12 = vmul.f32 %v2613_v57, %v3698_v32  ;;  %v1804_v56 = vld [vmem:[%s3625_s7] sm:$0xff] }
 0x163   : > { %v3211_v24 = vadd.f32 %v3094_v59, %v807_v52  ;;  %v838_v11 = vadd.f32 %v774_v49, %v576_v12 }
 0x164   : > { %v3215_v27 = vpop.permute.xlu2 %613 }
 0x165   : > { %v741_v45 = vmul.f32 %v2588_v46, %v3215_v27  ;;  %1273 = vperm.xlu2 %2206, %v1235_v33   ;;  %v1164_v33 = vmax.f32 %v1100_v60, 0.0 }
 0x167   : > { %v932_v17 = vpop.permute.xlu1 %931  ;;  %v3225_v22 = vadd.f32 %v741_v45, %v3695_v14 }
 0x168   : > { %v1068_v37 = vadd.f32 %v932_v17, %v812_v48  ;;  %v1069_v28 = vadd.f32 %v932_v17, %v3088_v2 }
 0x169   : > { %1263 = vperm.xlu1 %2204, %v1233_v18  }
 0x16a   : > { %v1132_v44 = vmax.f32 %v1068_v37, 0.0  ;;  %v1133_v58 = vmax.f32 %v1069_v28, 0.0 }
 0x16c   : > { %v3238_v21 = vpop.permute.xlu2 %673  ;;  %v1204_v2 = vpack.c.bf16 %v1132_v44, %v1130_v61  ;;  %v3240_v38 = vpack.c.bf16 %v1133_v58, %v1131_v15  ;;  %v3701_v15 = vld [vmem:[#allocation8_spill] sm:$0xff] }
 0x16d   : > { %v771_v16 = vmul.f32 %v2588_v46, %v3238_v21  ;;  %1248 = vperm.xlu2 %2206, %v1230_v9   ;;  %v546_v3 = vmul.f32 %v2613_v57, %v3701_v15 }
 0x16e   : > { %1410 = vmatpush.bf16.msra.mxu0 %v1204_v2  ;;  %2114 = vmatpush.bf16.msra.mxu2 %v1204_v2  ;;  %v1662_v2 = vld [vmem:[%s3624_s6 + $0x20] sm:$0xff] }
 0x16f   : > { %v1007_v34 = vpop.permute.xlu1 %1006  ;;  %v3248_v4 = vadd.f32 %v771_v16, %v2907_v54  ;;  %v1096_v54 = vadd.f32 %v3123_v40, %v2941_v25  ;;  %v742_v25 = vmul.f32 %v2606_v55, %v3195_v20  ;;  %v744_v20 = vmul.f32 %v2606_v55, %v3158_v39 }
 0x170   : > { %v1098_v36 = vadd.f32 %v1007_v34, %v842_v1  ;;  %v1099_v52 = vadd.f32 %v1007_v34, %v3118_v42 }
 0x171   : > { %1668 = vperm.xlu1 %2204, %v1658_v43   ;;  %v1160_v14 = vmax.f32 %v1096_v54, 0.0  ;;  %v808_v60 = vadd.f32 %v744_v20, %v546_v3  ;;  %v3702_v43 = vld [vmem:[#allocation33_spill] sm:$0xff]  ;;  %v3703_v54 = vld [vmem:[#allocation23_spill] sm:$0xff] }
 0x172   : > { %v1162_v26 = vmax.f32 %v1098_v36, 0.0  ;;  %v1163_v45 = vmax.f32 %v1099_v52, 0.0  ;;  %v1806_v52 = vld [vmem:[%s3625_s7 + $0x10] sm:$0xff]  ;;  %v1894_v3 = vld [vmem:[#allocation2] sm:$0x1] }
 0x174   : > { %v1220_v35 = vpack.c.bf16 %v1164_v33, %v1162_v26  ;;  %v3260_v48 = vpack.c.bf16 %v1165_v62, %v1163_v45  ;;  %v1127_v62 = vmax.f32 %v3211_v24, 0.0  ;;  %v1807_v45 = vld [vmem:[%s3625_s7 + $0x18] sm:$0xff] }
 0x175   : > { %v997_v42 = vpop.permute.xlu2 %996  ;;  %1673 = vperm.xlu2 %2206, %v1659_v7  }
 0x176   : > { %v1094_v18 = vadd.f32 %v997_v42, %v838_v11  ;;  %v1095_v17 = vadd.f32 %v997_v42, %v3184_v19  ;;  %1459 = vmatpush.bf16.msra.mxu1 %v1220_v35  ;;  %2122 = vmatpush.bf16.msra.mxu3 %v1220_v35  ;;  %v544_v19 = vmul.f32 %v2613_v57, %v3699_v50  ;;  %v1664_v35 = vld [vmem:[%s3624_s6 + $0x30] sm:$0xff] }
 0x177   : > { %v3706_v50 = vld [vmem:[#allocation31_spill] sm:$0xff] }
 0x178   : > { %v1158_v40 = vmax.f32 %v1094_v18, 0.0  ;;  %v1159_v41 = vmax.f32 %v1095_v17, 0.0  ;;  %v610_v37 = vpop.permute.xlu1 %609  ;;  %v806_v9 = vadd.f32 %v742_v25, %v544_v19  ;;  %v3704_v18 = vld [vmem:[#allocation25_spill] sm:$0xff]  ;;  %v1809_v25 = vld [vmem:[%s3625_s7 + $0x28] sm:$0xff] }
 0x179   : > { %v739_v28 = vmul.f32 %v2588_v46, %v610_v37  ;;  %1683 = vperm.xlu1 %2204, %v1661_v10   ;;  %v1665_v10 = vld [vmem:[%s3624_s6 + $0x38] sm:$0xff] }
 0x17a   : > { %v1218_v61 = vpack.c.bf16 %v1160_v14, %v1158_v40  ;;  %v3275_v44 = vpack.c.bf16 %v1161_v47, %v1159_v41  ;;  %v1062_v1 = vadd.f32 %v3094_v59, %v806_v9  ;;  %v738_v14 = vmul.f32 %v2606_v55, %v610_v37  ;;  %v3705_v41 = vld [vmem:[#allocation11_spill] sm:$0xff]  ;;  %v1811_v37 = vld [vmem:[%s3625_s7 + $0x38] sm:$0xff]  ;;  %v907_v9 = vpop.permute.xlu0 %906 }
 0x17b   : > { %v803_v58 = vadd.f32 %v739_v28, %v3700_v13  ;;  %v540_v28 = vmul.f32 %v2613_v57, %v3705_v41  ;;  %v3707_v13 = vld [vmem:[#allocation13_spill] sm:$0xff] }
 0x17c   : > { %1460 = vmatpush.bf16.msra.mxu1 %v1218_v61  ;;  %2123 = vmatpush.bf16.msra.mxu3 %v1218_v61  ;;  %v1126_v33 = vmax.f32 %v1062_v1, 0.0  ;;  %v740_v61 = vmul.f32 %v2606_v55, %v3215_v27  ;;  %v542_v20 = vmul.f32 %v2613_v57, %v3707_v13 }
 0x17d   : > { %1814 = vperm.xlu2 %2206, %v1804_v56   ;;  %v802_v56 = vadd.f32 %v738_v14, %v540_v28  ;;  %v3710_v28 = vld [vmem:[#allocation30_spill] sm:$0xff] }
 0x17e   : > { %v3282_v23 = vpop.permute.xlu2 %605  ;;  %v804_v15 = vadd.f32 %v740_v61, %v542_v20 }
 0x17f   : > { %v737_v16 = vmul.f32 %v2588_v46, %v3282_v23 }
 0x181   : > { %v922_v39 = vpop.permute.xlu1 %921  ;;  %1688 = vperm.xlu1 %2204, %v1662_v2   ;;  %v3291_v34 = vadd.f32 %v737_v16, %v3702_v43  ;;  %v1058_v2 = vadd.f32 %v907_v9, %v802_v56  ;;  %v1059_v16 = vadd.f32 %v907_v9, %v803_v58  ;;  %v572_v58 = vmul.f32 %v2613_v57, %v2903_v53 }
 0x182   : > { %v1064_v49 = vadd.f32 %v922_v39, %v808_v60  ;;  %v1065_v36 = vadd.f32 %v922_v39, %v3167_v6  ;;  %v3708_v60 = vld [vmem:[#allocation24_spill] sm:$0xff] }
 0x183   : > { %v574_v1 = vmul.f32 %v2613_v57, %v3708_v60 }
 0x184   : > { %v1128_v32 = vmax.f32 %v1064_v49, 0.0  ;;  %v1129_v12 = vmax.f32 %v1065_v36, 0.0  ;;  %v770_v49 = vmul.f32 %v2606_v55, %v3238_v21  ;;  %v736_v21 = vmul.f32 %v2606_v55, %v3282_v23 }
 0x185   : > { %1824 = vperm.xlu2 %2206, %v1806_v52  }
 0x186   : > { %v3298_v26 = vpop.permute.xlu2 %665  ;;  %v1202_v59 = vpack.c.bf16 %v1128_v32, %v1126_v33  ;;  %v3303_v7 = vpack.c.bf16 %v1129_v12, %v1127_v62  ;;  %v1122_v33 = vmax.f32 %v1058_v2, 0.0  ;;  %v1123_v62 = vmax.f32 %v1059_v16, 0.0  ;;  %v2008_v16 = vld [vmem:[%s3621_s3] sm:$0xf] }
 0x187   : > { %v767_v6 = vmul.f32 %v2588_v46, %v3298_v26 }
 0x188   : > { %1411 = vmatpush.bf16.msra.mxu0 %v1202_v59  ;;  %2115 = vmatpush.bf16.msra.mxu2 %v1202_v59 }
 0x189   : > { %v3308_v11 = vadd.f32 %v767_v6, %v3703_v54  ;;  %1829 = vperm.xlu1 %2204, %v1807_v45  }
 0x18a   : > { %v678_v24 = vpop.permute.xlu1 %677 }
 0x18b   : > { %v773_v42 = vmul.f32 %v2588_v46, %v678_v24 }
 0x18d   : > { %1698 = vperm.xlu2 %2206, %v1664_v35   ;;  %v837_v17 = vadd.f32 %v773_v42, %v3704_v18  ;;  %v3709_v18 = vld [vmem:[#allocation32_spill] sm:$0xff] }
 0x18f   : > { %v992_v36 = vpop.permute.xlu2 %991 }
 0x190   : > { %v1093_v54 = vadd.f32 %v992_v36, %v837_v17 }
 0x191   : > { %1703 = vperm.xlu1 %2204, %v1665_v10   ;;  %v538_v10 = vmul.f32 %v2613_v57, %v3709_v18 }
 0x192   : > { %v602_v47 = vpop.permute.xlu1 %601  ;;  %v1157_v53 = vmax.f32 %v1093_v54, 0.0  ;;  %v2090_v54 = vld [vmem:[%s3621_s3 + $0x4] sm:$0xf] }
 0x193   : > { %v735_v40 = vmul.f32 %v2588_v46, %v602_v47  ;;  %v772_v46 = vmul.f32 %v2606_v55, %v678_v24  ;;  %v800_v61 = vadd.f32 %v736_v21, %v538_v10 }
 0x195   : > { %1839 = vperm.xlu2 %2206, %v1809_v25   ;;  %v799_v19 = vadd.f32 %v735_v40, %v3706_v50  ;;  %v836_v52 = vadd.f32 %v772_v46, %v574_v1  ;;  %v734_v25 = vmul.f32 %v2606_v55, %v602_v47  ;;  %v536_v50 = vmul.f32 %v2613_v57, %v3710_v28  ;;  %v3711_v47 = vld [vmem:[#allocation22_spill] sm:$0xff]  ;;  %v2024_v28 = vld [vmem:[%s3621_s3 + $0x20] sm:$0xf] }
 0x196   : > { %v568_v9 = vmul.f32 %v2613_v57, %v3711_v47 }
 0x197   : > { %v1092_v6 = vadd.f32 %v992_v36, %v836_v52  ;;  %v902_v17 = vpop.permute.xlu2 %901  ;;  %v798_v20 = vadd.f32 %v734_v25, %v536_v50  ;;  %v2064_v25 = vld [vmem:[%s3621_s3 + $0x70] sm:$0xf] }
 0x198   : > { %v1056_v23 = vadd.f32 %v902_v17, %v800_v61  ;;  %v1057_v13 = vadd.f32 %v902_v17, %v3291_v34  ;;  %v2056_v34 = vld [vmem:[%s3621_s3 + $0x60] sm:$0xf]  ;;  %v2097_v61 = vld [vmem:[%s3621_s3 + $0x34] sm:$0xf0] }
 0x199   : > { %1849 = vperm.xlu1 %2204, %v1811_v37   ;;  %v1156_v14 = vmax.f32 %v1092_v6, 0.0 }
 0x19a   : > { %v1121_v60 = vmax.f32 %v1057_v13, 0.0  ;;  %v2040_v13 = vld [vmem:[%s3621_s3 + $0x40] sm:$0xf] }
 0x19b   : > { %v912_v27 = vpop.permute.xlu1 %911 }
 0x19c   : > { %v1060_v39 = vadd.f32 %v912_v27, %v804_v15  ;;  %v1061_v43 = vadd.f32 %v912_v27, %v3225_v22  ;;  %v834_v22 = vadd.f32 %v770_v49, %v572_v58  ;;  %v977_v27 = vpop.permute.xlu0 %976  ;;  %v3713_v58 = vld [vmem:[#allocation27_spill] sm:$0xff] }
 0x19d   : > { %1897 = vperm.xlu2 %2206, %v1894_v3  }
 0x19e   : > { %v1124_v32 = vmax.f32 %v1060_v39, 0.0  ;;  %v1125_v12 = vmax.f32 %v1061_v43, 0.0 }
 0x1a0   : > { %v1200_v59 = vpack.c.bf16 %v1124_v32, %v1122_v33  ;;  %v3341_v45 = vpack.c.bf16 %v1125_v12, %v1123_v62  ;;  %v1087_v32 = vadd.f32 %v977_v27, %v3308_v11  ;;  %v3712_v33 = vld [vmem:[#allocation26_spill] sm:$0xff] }
 0x1a1   : > { %v2010_v11 = vld [vmem:[%s3621_s3 + $0x8] sm:$0xf0] }
 0x1a2   : > { %1412 = vmatpush.bf16.msra.mxu0 %v1200_v59  ;;  %2116 = vmatpush.bf16.msra.mxu2 %v1200_v59  ;;  %v2013_v10 = vor.u32 %v2090_v54, %v2010_v11 }
 0x1a3   : > { %v987_v24 = vpop.permute.xlu1 %986 }
 0x1a4   : > { %v1090_v35 = vadd.f32 %v987_v24, %v834_v22  ;;  %v1091_v42 = vadd.f32 %v987_v24, %v3248_v4  ;;  %v766_v4 = vmul.f32 %v2606_v55, %v3298_v26  ;;  %v2091_v55 = vld [vmem:[%s3621_s3 + $0x4] sm:$0xf0]  ;;  %v1120_v26 = vmax.f32 %v1056_v23, 0.0 }
 0x1a5   : > { %v2009_v49 = vor.u32 %v2091_v55, %v2008_v16  ;;  %v1151_v22 = vmax.f32 %v1087_v32, 0.0  ;;  %v3477_v55 = vpop.permute.xlu2 %1318 }
 0x1a6   : > { %v1154_v40 = vmax.f32 %v1090_v35, 0.0  ;;  %v1155_v41 = vmax.f32 %v1091_v42, 0.0  ;;  %v830_v2 = vadd.f32 %v766_v4, %v568_v9  ;;  %v2058_v35 = vld [vmem:[%s3621_s3 + $0x68] sm:$0xf0]  ;;  %v2034_v4 = vld [vmem:[%s3621_s3 + $0x38] sm:$0xf0] }
 0x1a7   : > { %v2098_v9 = vld [vmem:[%s3621_s3 + $0x44] sm:$0xf] }
 0x1a8   : > { %v1216_v56 = vpack.c.bf16 %v1156_v14, %v1154_v40  ;;  %v3351_v37 = vpack.c.bf16 %v1157_v53, %v1155_v41  ;;  %v1086_v52 = vadd.f32 %v977_v27, %v830_v2  ;;  %v2016_v53 = vld [vmem:[%s3621_s3 + $0x10] sm:$0xf]  ;;  %v2092_v41 = vld [vmem:[%s3621_s3 + $0x14] sm:$0xf]  ;;  %v2101_v2 = vld [vmem:[%s3621_s3 + $0x54] sm:$0xf0] }
 0x1aa   : > { %1461 = vmatpush.bf16.msra.mxu1 %v1216_v56  ;;  %2124 = vmatpush.bf16.msra.mxu3 %v1216_v56  ;;  %v1150_v6 = vmax.f32 %v1086_v52, 0.0 }
 0x1ab   : > { %v897_v46 = vpop.permute.xlu1 %896 }
 0x1ac   : > { %v1054_v15 = vadd.f32 %v897_v46, %v798_v20  ;;  %v1055_v3 = vadd.f32 %v897_v46, %v799_v19  ;;  %v2103_v19 = vld [vmem:[%s3621_s3 + $0x64] sm:$0xf0]  ;;  %v2042_v46 = vld [vmem:[%s3621_s3 + $0x48] sm:$0xf0] }
 0x1ad   : > { %v3370_v36 = vor.u32 %v2103_v19, %v2056_v34  ;;  %v2099_v20 = vld [vmem:[%s3621_s3 + $0x44] sm:$0xf0]  ;;  %v2100_v34 = vld [vmem:[%s3621_s3 + $0x54] sm:$0xf] }
 0x1ae   : > { %v1118_v1 = vmax.f32 %v1054_v15, 0.0  ;;  %v1119_v57 = vmax.f32 %v1055_v3, 0.0  ;;  %v2041_v47 = vor.u32 %v2099_v20, %v2040_v13  ;;  %v2045_v15 = vor.u32 %v2098_v9, %v2042_v46  ;;  %v2048_v3 = vld [vmem:[%s3621_s3 + $0x50] sm:$0xf] }
 0x1af   : > { %v2049_v16 = vor.u32 %v2101_v2, %v2048_v3 }
 0x1b0   : > { %v1198_v39 = vpack.c.bf16 %v1120_v26, %v1118_v1  ;;  %v1199_v43 = vpack.c.bf16 %v1121_v60, %v1119_v57  ;;  %v2050_v26 = vld [vmem:[%s3621_s3 + $0x58] sm:$0xf0]  ;;  %v3485_v1 = vpop.permute.xlu2 %1308  ;;  %v3487_v57 = vpop.permute.xlu0 %1313 }
 0x1b1   : > { %v2053_v60 = vor.u32 %v2100_v34, %v2050_v26 }
 0x1b2   : > { %1413 = vmatpush.bf16.msra.mxu0 %v1198_v39  ;;  %2117 = vmatpush.bf16.msra.mxu2 %v1198_v39 }
 0x1b3   : > { %v982_v12 = vpop.permute.xlu1 %981 }
 0x1b4   : > { %v1088_v62 = vadd.f32 %v982_v12, %v3712_v33  ;;  %v1089_v59 = vadd.f32 %v982_v12, %v3713_v58 }
 0x1b5   : > { %1414 = vmatmul.bf16.vlgmr.msra.gmra.mxu0 %v2009_v49  ;;  %1444 = vmatmul.bf16.vlgmr.msra.gmra.mxu2 %v3370_v36 }
 0x1b6   : > { %1504 = vmatpush.bf16.msrb.mxu2 %v2974_v29  ;;  %v1152_v24 = vmax.f32 %v1088_v62, 0.0  ;;  %v1153_v21 = vmax.f32 %v1089_v59, 0.0  ;;  %v2102_v29 = vld [vmem:[%s3621_s3 + $0x64] sm:$0xf] }
 0x1b7   : > { %v3390_v14 = vor.u32 %v2102_v29, %v2058_v35 }
 0x1b8   : > { %v1214_v42 = vpack.c.bf16 %v1152_v24, %v1150_v6  ;;  %v1215_v18 = vpack.c.bf16 %v1153_v21, %v1151_v22  ;;  %v3489_v19 = vpop.permute.xlu2 %1303  ;;  %v3491_v27 = vpop.permute.xlu0 %1288 }
 0x1ba   : > { %1505 = vmatpush.bf16.msrb.mxu2 %v3000_v51  ;;  %1462 = vmatpush.bf16.msra.mxu1 %v1214_v42  ;;  %v2093_v51 = vld [vmem:[%s3621_s3 + $0x14] sm:$0xf0] }
 0x1bb   : > { %2125 = vmatpush.bf16.msra.mxu3 %v1214_v42 }
 0x1bd   : > { %1463 = vmatmul.bf16.vlgmr.msra.gmra.mxu1 %v2013_v10 }
 0x1be   : > { %1506 = vmatpush.bf16.msrb.mxu2 %v3078_v30  ;;  %1493 = vmatmul.bf16.vlgmr.msra.gmra.mxu3 %v3390_v14  ;;  %v2105_v30 = vld [vmem:[%s3621_s3 + $0x74] sm:$0xf0] }
 0x1bf   : > { %1553 = vmatpush.bf16.msrb.mxu3 %v2922_v63  ;;  %v2017_v63 = vor.u32 %v2093_v51, %v2016_v53  ;;  %v3409_v40 = vor.u32 %v2105_v30, %v2064_v25 }
 0x1c0   : > { %v3493_v39 = vpop.permute.xlu2 %1278 }
 0x1c2   : > { %1507 = vmatpush.bf16.msrb.mxu2 %v3179_v0  ;;  %v2018_v0 = vld [vmem:[%s3621_s3 + $0x18] sm:$0xf0] }
 0x1c3   : > { %1554 = vmatpush.bf16.msrb.mxu3 %v3029_v8  ;;  %v2104_v8 = vld [vmem:[%s3621_s3 + $0x74] sm:$0xf] }
 0x1c5   : > { %1419 = vmatmul.bf16.gmra.mxu0 %v2017_v63  ;;  %1449 = vmatmul.bf16.gmra.mxu2 %v3409_v40 }
 0x1c6   : > { %1508 = vmatpush.bf16.msrb.mxu2 %v3240_v38  ;;  %v2066_v38 = vld [vmem:[%s3621_s3 + $0x78] sm:$0xf0] }
 0x1c7   : > { %1555 = vmatpush.bf16.msrb.mxu3 %v3134_v5  ;;  %v2021_v5 = vor.u32 %v2092_v41, %v2018_v0  ;;  %v3428_v17 = vor.u32 %v2104_v8, %v2066_v38 }
 0x1c8   : > { %v3499_v52 = vpop.permute.xlu2 %1273 }
 0x1ca   : > { %1509 = vmatpush.bf16.msrb.mxu2 %v3303_v7  ;;  %v2095_v7 = vld [vmem:[%s3621_s3 + $0x24] sm:$0xf0] }
 0x1cb   : > { %1556 = vmatpush.bf16.msrb.mxu3 %v3148_v31  ;;  %v2025_v31 = vor.u32 %v2095_v7, %v2024_v28 }
 0x1cd   : > { %1468 = vmatmul.bf16.gmra.mxu1 %v2021_v5 }
 0x1ce   : > { %1510 = vmatpush.bf16.msrb.mxu2 %v3341_v45  ;;  %1498 = vmatmul.bf16.gmra.mxu3 %v3428_v17  ;;  %v2026_v45 = vld [vmem:[%s3621_s3 + $0x28] sm:$0xf0] }
 0x1cf   : > { %1557 = vmatpush.bf16.msrb.mxu3 %v3260_v48  ;;  %v2094_v48 = vld [vmem:[%s3621_s3 + $0x24] sm:$0xf] }
 0x1d0   : > { %v2029_v50 = vor.u32 %v2094_v48, %v2026_v45  ;;  %v1249_v62 = vpop.permute.xlu2 %1248 }
 0x1d2   : > { %1511 = vmatpush.bf16.msrb.mxu2 %v1199_v43  ;;  %v3495_v43 = vpop.permute.xlu1 %1323 }
 0x1d3   : > { %1558 = vmatpush.bf16.msrb.mxu3 %v3275_v44  ;;  %v2032_v44 = vld [vmem:[%s3621_s3 + $0x30] sm:$0xf] }
 0x1d4   : > { %v2033_v56 = vor.u32 %v2097_v61, %v2032_v44 }
 0x1d5   : > { %1424 = vmatmul.bf16.gmra.mxu0 %v2025_v31  ;;  %1512 = vmatmul.bf16.vlgmr.msrb.gmra.mxu2 %v2009_v49  ;;  %v3497_v49 = vpop.permute.xlu0 %1283 }
 0x1d7   : > { %1559 = vmatpush.bf16.msrb.mxu3 %v3351_v37  ;;  %v2096_v37 = vld [vmem:[%s3621_s3 + $0x34] sm:$0xf] }
 0x1d8   : > { %v2037_v23 = vor.u32 %v2096_v37, %v2034_v4 }
 0x1da   : > { %v3501_v32 = vpop.permute.xlu1 %1298 }
 0x1db   : > { %1560 = vmatpush.bf16.msrb.mxu3 %v1215_v18 }
 0x1dd   : > { %1473 = vmatmul.bf16.gmra.mxu1 %v2029_v50  ;;  %v3503_v33 = vpop.permute.xlu0 %1258 }
 0x1de   : > { %1561 = vmatmul.bf16.vlgmr.msrb.gmra.mxu3 %v2013_v10 }
 0x1e2   : > { %v3506_v11 = vpop.permute.xlu1 %1293 }
 0x1e5   : > { %1429 = vmatmul.bf16.gmra.mxu0 %v2033_v56  ;;  %1517 = vmatmul.bf16.gmra.mxu2 %v2017_v63  ;;  %v1254_v24 = vpop.permute.xlu0 %1253 }
 0x1ea   : > { %v3509_v53 = vpop.permute.xlu1 %1268 }
 0x1ed   : > { %1478 = vmatmul.bf16.gmra.mxu1 %v2037_v23 }
 0x1ee   : > { %1566 = vmatmul.bf16.gmra.mxu3 %v2021_v5 }
 0x1f2   : > { %v1264_v38 = vpop.permute.xlu1 %1263 }
 0x1f5   : > { %1434 = vmatmul.bf16.gmra.mxu0 %v2041_v47  ;;  %1522 = vmatmul.bf16.gmra.mxu2 %v2025_v31 }
 0x1fd   : > { %1483 = vmatmul.bf16.gmra.mxu1 %v2045_v15 }
 0x1fe   : > { %1571 = vmatmul.bf16.gmra.mxu3 %v2029_v50 }
 0x205   : > { %1439 = vmatmul.bf16.gmra.mxu0 %v2049_v16  ;;  %1527 = vmatmul.bf16.gmra.mxu2 %v2033_v56 }
 0x20d   : > { %1488 = vmatmul.bf16.gmra.mxu1 %v2053_v60 }
 0x20e   : > { %1576 = vmatmul.bf16.gmra.mxu3 %v2037_v23 }
 0x215   : > { %1532 = vmatmul.bf16.gmra.mxu2 %v2041_v47 }
 0x21e   : > { %1581 = vmatmul.bf16.gmra.mxu3 %v2045_v15 }
 0x225   : > { %1537 = vmatmul.bf16.gmra.mxu2 %v2049_v16 }
 0x22e   : > { %1586 = vmatmul.bf16.gmra.mxu3 %v2053_v60 }
 0x232   : > { %v1415_v12 = vpop.f32.mrf.mxu0 }
 0x233   : > { %v1416_v59 = vadd.f32 %v1415_v12, %v1249_v62 }
 0x235   : > { %1542 = vmatmul.bf16.gmra.mxu2 %v3370_v36 }
 0x238   : > { %v1445_v58 = vpop.f32.mrf.mxu2 }
 0x239   : > { %v1446_v13 = vadd.f32 %v1445_v58, %v3485_v1 }
 0x23a   : > { %v1417_v6 = vpop.f32.mrf.mxu0  ;;  %v1464_v54 = vpop.f32.mrf.mxu1 }
 0x23b   : > { %v1465_v22 = vadd.f32 %v1464_v54, %v1416_v59  ;;  %v1418_v35 = vadd.f32 %v1417_v6, %v1254_v24 }
 0x23d   : > { %v1602_v36 = vmax.f32 %v1465_v22, 0.0 }
 0x23e   : > { %1591 = vmatmul.bf16.gmra.mxu3 %v3390_v14 }
 0x240   : > { %v1447_v21 = vpop.f32.mrf.mxu2 }
 0x241   : > { %v1494_v29 = vpop.f32.mrf.mxu3  ;;  %v1448_v61 = vadd.f32 %v1447_v21, %v3487_v57 }
 0x242   : > { %v1420_v42 = vpop.f32.mrf.mxu0  ;;  %v1466_v18 = vpop.f32.mrf.mxu1  ;;  %v1495_v3 = vadd.f32 %v1494_v29, %v1446_v13 }
 0x243   : > { %v1467_v10 = vadd.f32 %v1466_v18, %v1418_v35  ;;  %v1421_v41 = vadd.f32 %v1420_v42, %v3503_v33 }
 0x244   : > { %v1626_v12 = vmax.f32 %v1495_v3, 0.0 }
 0x245   : > { %v1604_v51 = vmax.f32 %v1467_v10, 0.0  ;;  %1547 = vmatmul.bf16.gmra.mxu2 %v3409_v40 }
 0x247   : > { %v3512_v25 = vpack.c.bf16 %v1604_v51, %v1602_v36 }
 0x248   : > { %v1450_v30 = vpop.f32.mrf.mxu2 }
 0x249   : > { %v1496_v63 = vpop.f32.mrf.mxu3  ;;  %v1451_v40 = vadd.f32 %v1450_v30, %v3477_v55 }
 0x24a   : > { %v1422_v14 = vpop.f32.mrf.mxu0  ;;  %v1469_v0 = vpop.f32.mrf.mxu1  ;;  %v1497_v20 = vadd.f32 %v1496_v63, %v1448_v61 }
 0x24b   : > { %v1470_v8 = vadd.f32 %v1469_v0, %v1421_v41  ;;  %v1423_v7 = vadd.f32 %v1422_v14, %v1264_v38 }
 0x24c   : > { %v1628_v26 = vmax.f32 %v1497_v20, 0.0 }
 0x24d   : > { %v1606_v50 = vmax.f32 %v1470_v8, 0.0 }
 0x24e   : > { %1596 = vmatmul.bf16.gmra.mxu3 %v3428_v17  ;;  %v1654_v22 = vpack.c.bf16 %v1628_v26, %v1626_v12 }
 0x250   : > { %v1452_v5 = vpop.f32.mrf.mxu2 }
 0x251   : > { %v1499_v28 = vpop.f32.mrf.mxu3  ;;  %v1453_v56 = vadd.f32 %v1452_v5, %v3495_v43 }
 0x252   : > { %v1425_v31 = vpop.f32.mrf.mxu0  ;;  %v1471_v48 = vpop.f32.mrf.mxu1  ;;  %v1500_v37 = vadd.f32 %v1499_v28, %v1451_v40 }
 0x253   : > { %v1472_v45 = vadd.f32 %v1471_v48, %v1423_v7  ;;  %v1426_v47 = vadd.f32 %v1425_v31, %v3509_v53 }
 0x254   : > { %v1630_v2 = vmax.f32 %v1500_v37, 0.0 }
 0x255   : > { %v1608_v44 = vmax.f32 %v1472_v45, 0.0 }
 0x257   : > { %v3519_v4 = vpack.c.bf16 %v1608_v44, %v1606_v50 }
 0x258   : > { %v1513_v17 = vpop.f32.mrf.mxu2 }
 0x259   : > { %v1501_v23 = vpop.f32.mrf.mxu3  ;;  %v1514_v59 = vadd.f32 %v1513_v17, %v1249_v62 }
 0x25a   : > { %v1502_v9 = vadd.f32 %v1501_v23, %v1453_v56  ;;  %v3523_v46 = vpop.f32.mrf.mxu0  ;;  %v1474_v15 = vpop.f32.mrf.mxu1 }
 0x25b   : > { %v3525_v34 = vadd.f32 %v1474_v15, %v1426_v47 }
 0x25c   : > { %v1632_v16 = vmax.f32 %v1502_v9, 0.0 }
 0x25e   : > { %v1656_v60 = vpack.c.bf16 %v1632_v16, %v1630_v2 }
 0x260   : > { %1730 = vmatpush.bf16.msrb.mxu0 %v1656_v60  ;;  %v1515_v6 = vpop.f32.mrf.mxu2 }
 0x261   : > { %v1562_v54 = vpop.f32.mrf.mxu3  ;;  %v1516_v42 = vadd.f32 %v1515_v6, %v1254_v24 }
 0x262   : > { %v1563_v58 = vadd.f32 %v1562_v54, %v1514_v59  ;;  %v1430_v21 = vpop.f32.mrf.mxu0  ;;  %v3527_v35 = vpop.f32.mrf.mxu1 }
 0x264   : > { %1731 = vmatpush.bf16.msrb.mxu0 %v1654_v22  ;;  %v1603_v30 = vmax.f32 %v1563_v58, 0.0 }
 0x268   : > { %v1518_v18 = vpop.f32.mrf.mxu2 }
 0x269   : > { %v1564_v29 = vpop.f32.mrf.mxu3  ;;  %v1519_v62 = vadd.f32 %v1518_v18, %v3503_v33 }
 0x26a   : > { %v1565_v10 = vadd.f32 %v1564_v29, %v1516_v42  ;;  %v1432_v36 = vpop.f32.mrf.mxu0  ;;  %v1479_v51 = vpop.f32.mrf.mxu1 }
 0x26c   : > { %v1605_v63 = vmax.f32 %v1565_v10, 0.0 }
 0x26e   : > { %v3529_v41 = vpack.c.bf16 %v1605_v63, %v1603_v30  ;;  %v1433_v30 = vadd.f32 %v1432_v36, %v3497_v49 }
 0x270   : > { %v1520_v14 = vpop.f32.mrf.mxu2 }
 0x271   : > { %v1567_v0 = vpop.f32.mrf.mxu3  ;;  %v1521_v7 = vadd.f32 %v1520_v14, %v1264_v38 }
 0x272   : > { %v1568_v8 = vadd.f32 %v1567_v0, %v1519_v62  ;;  %v1435_v5 = vpop.f32.mrf.mxu0  ;;  %v1481_v28 = vpop.f32.mrf.mxu1  ;;  %v1431_v0 = vadd.f32 %v1430_v21, %v3493_v39 }
 0x273   : > { %v1436_v18 = vadd.f32 %v1435_v5, %v3491_v27 }
 0x274   : > { %v1607_v50 = vmax.f32 %v1568_v8, 0.0  ;;  %v1482_v8 = vadd.f32 %v1481_v28, %v1433_v30  ;;  %v1480_v5 = vadd.f32 %v1479_v51, %v1431_v0  ;;  %v1610_v51 = vmax.f32 %v3525_v34, 0.0  ;;  %v2107_v34 = vld [vmem:[%s3623_s5 + $0x8] sm:$0xff] }
 0x276   : > { %v1614_v21 = vmax.f32 %v1480_v5, 0.0 }
 0x278   : > { %v1523_v31 = vpop.f32.mrf.mxu2 }
 0x279   : > { %v1569_v48 = vpop.f32.mrf.mxu3  ;;  %v1524_v56 = vadd.f32 %v1523_v31, %v3509_v53 }
 0x27a   : > { %v1570_v24 = vadd.f32 %v1569_v48, %v1521_v7  ;;  %v1437_v45 = vpop.f32.mrf.mxu0  ;;  %v1484_v40 = vpop.f32.mrf.mxu1 }
 0x27b   : > { %v1438_v6 = vadd.f32 %v1437_v45, %v3506_v11  ;;  %v1485_v63 = vadd.f32 %v1484_v40, %v1436_v18  ;;  %v1616_v40 = vmax.f32 %v1482_v8, 0.0 }
 0x27c   : > { %v1609_v44 = vmax.f32 %v1570_v24, 0.0  ;;  %v1428_v24 = vadd.f32 %v3523_v46, %v3499_v52 }
 0x27e   : > { %v3532_v61 = vpack.c.bf16 %v1609_v44, %v1607_v50  ;;  %v1618_v44 = vmax.f32 %v1485_v63, 0.0  ;;  %v1477_v36 = vadd.f32 %v3527_v35, %v1428_v24 }
 0x280   : > { %v1525_v37 = vpop.f32.mrf.mxu2 }
 0x281   : > { %v1572_v23 = vpop.f32.mrf.mxu3  ;;  %v1526_v20 = vadd.f32 %v1525_v37, %v3499_v52  ;;  %v1648_v52 = vpack.c.bf16 %v1616_v40, %v1614_v21 }
 0x282   : > { %v1573_v33 = vadd.f32 %v1572_v23, %v1524_v56  ;;  %v1486_v17 = vpop.f32.mrf.mxu1  ;;  %v1440_v13 = vpop.f32.mrf.mxu0 }
 0x283   : > { %v1441_v60 = vadd.f32 %v1440_v13, %v3501_v32  ;;  %v1487_v29 = vadd.f32 %v1486_v17, %v1438_v6 }
 0x284   : > { %v1611_v3 = vmax.f32 %v1573_v33, 0.0 }
 0x285   : > { %v1620_v7 = vmax.f32 %v1487_v29, 0.0 }
 0x288   : > { %v1528_v47 = vpop.f32.mrf.mxu2 }
 0x289   : > { %v1574_v38 = vpop.f32.mrf.mxu3  ;;  %v1529_v53 = vadd.f32 %v1528_v47, %v3493_v39  ;;  %v1650_v39 = vpack.c.bf16 %v1620_v7, %v1618_v44 }
 0x28a   : > { %v1575_v9 = vadd.f32 %v1574_v38, %v1526_v20  ;;  %v1489_v15 = vpop.f32.mrf.mxu1  ;;  %v1442_v26 = vpop.f32.mrf.mxu0  ;;  %v2106_v38 = vld [vmem:[%s3623_s5] sm:$0xff] }
 0x28b   : > { %v1443_v54 = vadd.f32 %v1442_v26, %v3489_v19  ;;  %v1490_v58 = vadd.f32 %v1489_v15, %v1441_v60 }
 0x28c   : > { %v1613_v2 = vmax.f32 %v1575_v9, 0.0 }
 0x28d   : > { %v1622_v62 = vmax.f32 %v1490_v58, 0.0 }
 0x28e   : > { %v3536_v16 = vpack.c.bf16 %v1613_v2, %v1611_v3 }
 0x290   : > { %v1530_v12 = vpop.f32.mrf.mxu2 }
 0x291   : > { %v1577_v59 = vpop.f32.mrf.mxu3  ;;  %v1531_v31 = vadd.f32 %v1530_v12, %v3497_v49  ;;  %v1612_v49 = vmax.f32 %v1477_v36, 0.0  ;;  %v1669_v36 = vpop.permute.xlu1 %1668 }
 0x292   : > { %v1578_v22 = vadd.f32 %v1577_v59, %v1529_v53  ;;  %v1491_v42 = vpop.f32.mrf.mxu1  ;;  %v2108_v53 = vld [vmem:[%s3623_s5 + $0x10] sm:$0xff] }
 0x293   : > { %v1492_v10 = vadd.f32 %v1491_v42, %v1443_v54  ;;  %v1646_v20 = vpack.c.bf16 %v1612_v49, %v1610_v51 }
 0x294   : > { %v1615_v37 = vmax.f32 %v1578_v22, 0.0 }
 0x295   : > { %v1624_v14 = vmax.f32 %v1492_v10, 0.0 }
 0x297   : > { %v1652_v48 = vpack.c.bf16 %v1624_v14, %v1622_v62  ;;  %v2109_v14 = vld [vmem:[%s3623_s5 + $0x18] sm:$0xff] }
 0x298   : > { %v1533_v45 = vpop.f32.mrf.mxu2 }
 0x299   : > { %v1579_v50 = vpop.f32.mrf.mxu3  ;;  %1732 = vmatpush.bf16.msrb.mxu0 %v1652_v48  ;;  %v1534_v33 = vadd.f32 %v1533_v45, %v3491_v27 }
 0x29a   : > { %v1580_v56 = vadd.f32 %v1579_v50, %v1531_v31 }
 0x29c   : > { %v1617_v23 = vmax.f32 %v1580_v56, 0.0 }
 0x29d   : > { %1733 = vmatpush.bf16.msrb.mxu0 %v1650_v39  ;;  %v1684_v39 = vpop.permute.xlu1 %1683 }
 0x29e   : > { %v3549_v28 = vpack.c.bf16 %v1617_v23, %v1615_v37  ;;  %v1674_v37 = vpop.permute.xlu2 %1673  ;;  %v1679_v23 = vpop.permute.xlu0 %1678 }
 0x2a0   : > { %v1535_v46 = vpop.f32.mrf.mxu2 }
 0x2a1   : > { %v1582_v17 = vpop.f32.mrf.mxu3  ;;  %1734 = vmatpush.bf16.msrb.mxu0 %v1648_v52  ;;  %v1536_v8 = vadd.f32 %v1535_v46, %v3506_v11 }
 0x2a2   : > { %v1583_v13 = vadd.f32 %v1582_v17, %v1534_v33 }
 0x2a4   : > { %v1619_v5 = vmax.f32 %v1583_v13, 0.0 }
 0x2a5   : > { %1735 = vmatpush.bf16.msrb.mxu0 %v1646_v20 }
 0x2a6   : > { %v3578_v49 = vpop.permute.xlu2 %1814 }
 0x2a8   : > { %v1538_v35 = vpop.f32.mrf.mxu2 }
 0x2a9   : > { %v1584_v47 = vpop.f32.mrf.mxu3  ;;  %1736 = vmatpush.bf16.msrb.mxu0 %v3519_v4 }
 0x2aa   : > { %v1585_v31 = vadd.f32 %v1584_v47, %v1536_v8 }
 0x2ac   : > { %v1621_v45 = vmax.f32 %v1585_v31, 0.0 }
 0x2ad   : > { %1737 = vmatpush.bf16.msrb.mxu0 %v3512_v25 }
 0x2ae   : > { %v1651_v44 = vpack.c.bf16 %v1621_v45, %v1619_v5  ;;  %v1825_v52 = vpop.permute.xlu2 %1824 }
 0x2b0   : > { %v1540_v27 = vpop.f32.mrf.mxu2  ;;  %1738 = vmatmul.bf16.vlgmr.msrb.gmra.mxu0 %v2106_v38 }
 0x2b1   : > { %v1587_v9 = vpop.f32.mrf.mxu3  ;;  %v1541_v10 = vadd.f32 %v1540_v27, %v3489_v19 }
 0x2b8   : > { %v1543_v15 = vpop.f32.mrf.mxu2 }
 0x2b9   : > { %v1589_v3 = vpop.f32.mrf.mxu3  ;;  %v1544_v42 = vadd.f32 %v1543_v15, %v3485_v1 }
 0x2c0   : > { %v1545_v2 = vpop.f32.mrf.mxu2  ;;  %1743 = vmatmul.bf16.gmra.mxu0 %v2107_v34 }
 0x2c1   : > { %v1592_v26 = vpop.f32.mrf.mxu3  ;;  %v1546_v6 = vadd.f32 %v1545_v2, %v3487_v57  ;;  %v1590_v57 = vadd.f32 %v1589_v3, %v1541_v10 }
 0x2c2   : > { %v1593_v30 = vadd.f32 %v1592_v26, %v1544_v42 }
 0x2c3   : > { %v1625_v19 = vmax.f32 %v1590_v57, 0.0 }
 0x2c4   : > { %v1627_v1 = vmax.f32 %v1593_v30, 0.0 }
 0x2c8   : > { %v1548_v4 = vpop.f32.mrf.mxu2 }
 0x2c9   : > { %v1594_v60 = vpop.f32.mrf.mxu3  ;;  %v1549_v59 = vadd.f32 %v1548_v4, %v3477_v55  ;;  %v1539_v55 = vadd.f32 %v1538_v35, %v3501_v32 }
 0x2ca   : > { %v1595_v18 = vadd.f32 %v1594_v60, %v1546_v6 }
 0x2cb   : > { %v1588_v7 = vadd.f32 %v1587_v9, %v1539_v55  ;;  %v1699_v9 = vpop.permute.xlu2 %1698 }
 0x2cc   : > { %v1629_v0 = vmax.f32 %v1595_v18, 0.0 }
 0x2cd   : > { %v1623_v24 = vmax.f32 %v1588_v7, 0.0 }
 0x2ce   : > { %v1655_v48 = vpack.c.bf16 %v1629_v0, %v1627_v1 }
 0x2cf   : > { %v1653_v50 = vpack.c.bf16 %v1625_v19, %v1623_v24 }
 0x2d0   : > { %1748 = vmatmul.bf16.gmra.mxu0 %v2108_v53  ;;  %v1550_v25 = vpop.f32.mrf.mxu2 }
 0x2d1   : > { %v1597_v12 = vpop.f32.mrf.mxu3  ;;  %v1551_v54 = vadd.f32 %v1550_v25, %v3495_v43 }
 0x2d2   : > { %v1598_v58 = vadd.f32 %v1597_v12, %v1549_v59 }
 0x2d4   : > { %v1631_v63 = vmax.f32 %v1598_v58, 0.0 }
 0x2d9   : > { %v1599_v22 = vpop.f32.mrf.mxu3 }
 0x2da   : > { %v1600_v29 = vadd.f32 %v1599_v22, %v1551_v54 }
 0x2dc   : > { %v1633_v62 = vmax.f32 %v1600_v29, 0.0 }
 0x2de   : > { %v1657_v43 = vpack.c.bf16 %v1633_v62, %v1631_v63  ;;  %v1840_v62 = vpop.permute.xlu2 %1839 }
 0x2e0   : > { %1759 = vmatpush.bf16.msrb.mxu1 %v1657_v43  ;;  %1753 = vmatmul.bf16.gmra.mxu0 %v2109_v14 }
 0x2e4   : > { %1760 = vmatpush.bf16.msrb.mxu1 %v1655_v48 }
 0x2e8   : > { %1761 = vmatpush.bf16.msrb.mxu1 %v1653_v50 }
 0x2ec   : > { %1762 = vmatpush.bf16.msrb.mxu1 %v1651_v44 }
 0x2f0   : > { %1763 = vmatpush.bf16.msrb.mxu1 %v3549_v28 }
 0x2f4   : > { %1764 = vmatpush.bf16.msrb.mxu1 %v3536_v16  ;;  %v1820_v16 = vpop.permute.xlu0 %1819 }
 0x2f8   : > { %1765 = vmatpush.bf16.msrb.mxu1 %v3532_v61  ;;  %v1689_v61 = vpop.permute.xlu1 %1688 }
 0x2fc   : > { %1766 = vmatpush.bf16.msrb.mxu1 %v3529_v41  ;;  %v1694_v46 = vpop.permute.xlu0 %1693 }
 0x2ff   : > { %1767 = vmatmul.bf16.vlgmr.msrb.gmra.mxu1 %v2106_v38 }
 0x300   : > { %v3580_v17 = vpop.permute.xlu1 %1829 }
 0x304   : > { %v1835_v2 = vpop.permute.xlu0 %1834 }
 0x308   : > { %v1704_v12 = vpop.permute.xlu1 %1703 }
 0x30c   : > { %v1845_v43 = vpop.permute.xlu0 %1844 }
 0x30f   : > { %1772 = vmatmul.bf16.gmra.mxu1 %v2107_v34 }
 0x310   : > { %v1850_v1 = vpop.permute.xlu1 %1849 }
 0x31f   : > { %1777 = vmatmul.bf16.gmra.mxu1 %v2108_v53 }
 0x32d   : > { %v1739_v32 = vpop.f32.mrf.mxu0 }
 0x32e   : > { %v1740_v35 = vadd.f32 %v1739_v32, %v1669_v36 }
 0x32f   : > { %1782 = vmatmul.bf16.gmra.mxu1 %v2109_v14 }
 0x330   : > { %v1788_v15 = vmax.f32 %v1740_v35, 0.0 }
 0x332   : > { %v1852_v59 = vmul.f32 %v3578_v49, %v1788_v15 }
 0x335   : > { %v1741_v11 = vpop.f32.mrf.mxu0 }
 0x336   : > { %v1742_v13 = vadd.f32 %v1741_v11, %v1674_v37 }
 0x338   : > { %v1790_v38 = vmax.f32 %v1742_v13, 0.0 }
 0x33a   : > { %v1854_v26 = vmul.f32 %v1820_v16, %v1790_v38 }
 0x33c   : > { %v1868_v22 = vadd.f32 %v1854_v26, %v1852_v59 }
 0x33d   : > { %v1744_v56 = vpop.f32.mrf.mxu0 }
 0x33e   : > { %v1745_v47 = vadd.f32 %v1744_v56, %v1679_v23 }
 0x340   : > { %v1792_v3 = vmax.f32 %v1745_v47, 0.0 }
 0x342   : > { %v1856_v6 = vmul.f32 %v1825_v52, %v1792_v3 }
 0x344   : > { %v1869_v10 = vadd.f32 %v1868_v22, %v1856_v6 }
 0x345   : > { %v1746_v40 = vpop.f32.mrf.mxu0 }
 0x346   : > { %v1747_v27 = vadd.f32 %v1746_v40, %v1684_v39 }
 0x348   : > { %v1794_v60 = vmax.f32 %v1747_v27, 0.0 }
 0x34a   : > { %v1858_v42 = vmul.f32 %v3580_v17, %v1794_v60 }
 0x34c   : > { %v1870_v14 = vadd.f32 %v1869_v10, %v1858_v42 }
 0x34d   : > { %v1749_v21 = vpop.f32.mrf.mxu0 }
 0x34e   : > { %v1750_v34 = vadd.f32 %v1749_v21, %v1689_v61 }
 0x350   : > { %v1796_v54 = vmax.f32 %v1750_v34, 0.0 }
 0x352   : > { %v1860_v30 = vmul.f32 %v1835_v2, %v1796_v54  ;;  %v1898_v54 = vpop.permute.xlu2 %1897 }
 0x353   : > { %v1900_v22 = vperm.slane %v1898_v54, 0 }
 0x354   : > { %v1871_v8 = vadd.f32 %v1870_v14, %v1860_v30 }
 0x355   : > { %v1751_v33 = vpop.f32.mrf.mxu0 }
 0x356   : > { %v1752_v4 = vadd.f32 %v1751_v33, %v1694_v46 }
 0x358   : > { %v1798_v18 = vmax.f32 %v1752_v4, 0.0 }
 0x35a   : > { %v1862_v55 = vmul.f32 %v1840_v62, %v1798_v18 }
 0x35c   : > { %v1872_v31 = vadd.f32 %v1871_v8, %v1862_v55 }
 0x35d   : > { %v1754_v51 = vpop.f32.mrf.mxu0 }
 0x35e   : > { %v1755_v58 = vadd.f32 %v1754_v51, %v1699_v9 }
 0x360   : > { %v1800_v63 = vmax.f32 %v1755_v58, 0.0 }
 0x362   : > { %v1864_v7 = vmul.f32 %v1845_v43, %v1800_v63 }
 0x364   : > { %v1873_v48 = vadd.f32 %v1872_v31, %v1864_v7  ;;  %v1919_v7 = vlaneseq }
 0x365   : > { %v1756_v25 = vpop.f32.mrf.mxu0 }
 0x366   : > { %v1757_v29 = vadd.f32 %v1756_v25, %v1704_v12  ;;  %vm1921_vm1 = vcmp.lt.s32.totalorder %v1919_v7, 256 }
 0x368   : > { %v1802_v57 = vmax.f32 %v1757_v29, 0.0 }
 0x36a   : > { %v1866_v19 = vmul.f32 %v1850_v1, %v1802_v57 }
 0x36c   : > { %v1874_v45 = vadd.f32 %v1873_v48, %v1866_v19 }
 0x36e   : > { %v1875_v56 = vrot.slane %v1874_v45, 4 }
 0x370   : > { %v1876_v47 = vadd.f32 %v1875_v56, %v1874_v45 }
 0x37c   : > { %v1768_v28 = vpop.f32.mrf.mxu1 }
 0x37d   : > { %v1769_v5 = vadd.f32 %v1768_v28, %v1669_v36  ;;  %v1877_v28 = vrot.slane %v1876_v47, 2 }
 0x37f   : > { %v1789_v40 = vmax.f32 %v1769_v5, 0.0  ;;  %v1878_v60 = vadd.f32 %v1877_v28, %v1876_v47 }
 0x381   : > { %v1853_v27 = vmul.f32 %v3578_v49, %v1789_v40 }
 0x384   : > { %v1770_v41 = vpop.f32.mrf.mxu1 }
 0x385   : > { %v1771_v24 = vadd.f32 %v1770_v41, %v1674_v37 }
 0x387   : > { %v1791_v32 = vmax.f32 %v1771_v24, 0.0 }
 0x389   : > { %v1855_v51 = vmul.f32 %v1820_v16, %v1791_v32 }
 0x38b   : > { %v1881_v41 = vadd.f32 %v1855_v51, %v1853_v27 }
 0x38c   : > { %v1773_v20 = vpop.f32.mrf.mxu1 }
 0x38d   : > { %v1774_v44 = vadd.f32 %v1773_v20, %v1679_v23 }
 0x38f   : > { %v1793_v21 = vmax.f32 %v1774_v44, 0.0 }
 0x391   : > { %v1857_v15 = vmul.f32 %v1825_v52, %v1793_v21  ;;  %v1879_v52 = vrot.slane %v1878_v60, 1 }
 0x394   : > { %v1775_v53 = vpop.f32.mrf.mxu1 }
 0x395   : > { %v1776_v11 = vadd.f32 %v1775_v53, %v1684_v39  ;;  %v1882_v39 = vadd.f32 %v1881_v41, %v1857_v15 }
 0x397   : > { %v1795_v13 = vmax.f32 %v1776_v11, 0.0 }
 0x399   : > { %v1859_v36 = vmul.f32 %v3580_v17, %v1795_v13  ;;  %v1880_v17 = vadd.f32 %v1879_v52, %v1878_v60 }
 0x39b   : > { %v1883_v26 = vadd.f32 %v1882_v39, %v1859_v36  ;;  %v1901_v42 = vadd.f32 %v1900_v22, %v1880_v17 }
 0x39c   : > { %v1778_v0 = vpop.f32.mrf.mxu1 }
 0x39d   : > { %v1779_v33 = vadd.f32 %v1778_v0, %v1689_v61  ;;  %v1903_v10 = vsub.f32 0.0, %v1901_v42 }
 0x39f   : > { %v1797_v3 = vmax.f32 %v1779_v33, 0.0 }
 0x3a1   : > { %v1861_v20 = vmul.f32 %v1835_v2, %v1797_v3 }
 0x3a4   : > { %v1780_v50 = vpop.f32.mrf.mxu1 }
 0x3a5   : > { %v1781_v35 = vadd.f32 %v1780_v50, %v1694_v46  ;;  %v1884_v46 = vadd.f32 %v1883_v26, %v1861_v20 }
 0x3a7   : > { %v1799_v23 = vmax.f32 %v1781_v35, 0.0 }
 0x3a9   : > { %v1863_v61 = vmul.f32 %v1840_v62, %v1799_v23 }
 0x3ab   : > { %v1885_v25 = vadd.f32 %v1884_v46, %v1863_v61 }
 0x3ac   : > { %v1783_v38 = vpop.f32.mrf.mxu1 }
 0x3ad   : > { %v1784_v37 = vadd.f32 %v1783_v38, %v1699_v9 }
 0x3af   : > { %v1801_v34 = vmax.f32 %v1784_v37, 0.0 }
 0x3b1   : > { %v1865_v4 = vmul.f32 %v1845_v43, %v1801_v34 }
 0x3b3   : > { %v1886_v59 = vadd.f32 %v1885_v25, %v1865_v4 }
 0x3b4   : > { %v1785_v16 = vpop.f32.mrf.mxu1 }
 0x3b5   : > { %v1786_v53 = vadd.f32 %v1785_v16, %v1704_v12  ;;  %v1905_v12 = vmul.f32 1.442695, %v1903_v10 }
 0x3b7   : > { %v1803_v49 = vmax.f32 %v1786_v53, 0.0  ;;  %2207 = vpow2.f32 %v1905_v12 }
 0x3b9   : > { %v1867_v9 = vmul.f32 %v1850_v1, %v1803_v49 }
 0x3bb   : > { %v1887_v6 = vadd.f32 %v1886_v59, %v1867_v9 }
 0x3bd   : > { %v1888_v58 = vrot.slane %v1887_v6, 4  ;;  %v2208_v57 = vpop.eup %2207 }
 0x3be   : > { %v1909_v43 = vadd.f32 1.0, %v2208_v57 }
 0x3bf   : > { %v1889_v2 = vadd.f32 %v1888_v58, %v1887_v6 }
 0x3c1   : > { %v1890_v18 = vrot.slane %v1889_v2, 2 }
 0x3c3   : > { %v1891_v29 = vadd.f32 %v1890_v18, %v1889_v2 }
 0x3c5   : > { %v1892_v30 = vrot.slane %v1891_v29, 1 }
 0x3c7   : > { %v1893_v63 = vadd.f32 %v1892_v30, %v1891_v29 }
 0x3c9   : > { %v1902_v62 = vadd.f32 %v1900_v22, %v1893_v63 }
 0x3cb   : > { %v1904_v14 = vsub.f32 0.0, %v1902_v62 }
 0x3cd   : > { %v1907_v55 = vmul.f32 1.442695, %v1904_v14 }
 0x3cf   : > { %2209 = vpow2.f32 %v1907_v55 }
 0x3d5   : > { %v2210_v0 = vpop.eup %2209 }
 0x3d6   : > { %v1910_v8 = vadd.f32 1.0, %v2210_v0 }
 0x3d8   : > { %2211 = vrcp.f32 %v1910_v8 }
 0x3d9   : > { %2213 = vrcp.f32 %v1909_v43 }
 0x3de   : > { %v2212_v1 = vpop.eup %2211 }
 0x3df   : > { %v1915_v31 = vrot.slane %v2212_v1, 7  ;;  %v2214_v19 = vpop.eup %2213 }
 0x3e1   : > { %v1917_v48 = vsel %vm1916_vm0, %v2214_v19, %v1915_v31 }
 0x3e2   : > { %1923 = vst.msk [vmem:[%s328_s24] sm:$0x3] %vm1921_vm1, %v1917_v48 }
 0x3e3   : > { %2242 = shalt.err (!%p2239_p3)
}
 0x3e4   : > { %2126 = dma.vmem_to_hbm [thread:$0]  (%p2371_p5), %s1938_s8, 32, %s1940_s25, %s1925_s26  }
 0x3e5 PF: > { %p2132_p4 = scmp.ge.s32.totalorder %s2277_s14, 2  ;;  %s1951_s10 = sand.u32 1, %s2265_s11  }
 0x3e6   : > { %s1952_s22 = scalar_lea.sflag [#allocation4], %s1951_s10 }
 0x3e7   : > { %p2129_p7 = pnand %p2132_p4, %p2375_p6 }
 0x3e9   : > { %p2130_p8 = pneg %p2129_p7 }
 0x3eb   : > { %2260 = dma.done.wait (%p2130_p8), %s1952_s22, 32  }
 0x3ec   : > { %2262 = vsyncadd (%p2130_p8), %s1952_s22, 4294967264  ;;  %p21_p9 = scmp.ge.s32.totalorder %s2357_s16, 6   ;;  %s3714_s11 = smov %s2269_s12 }
 0x3ed   : > { %s3715_s12 = smov %s2273_s13  ;;  %s3716_s13 = smov %s2369_s19 }
 0x3ee   : > { %s3717_s14 = smov %s2357_s16  ;;  %23 = sbr.rel (!%p21_p9) target bundleno = 6 (0x6), region = 91 }
 0x3f3   :  { %1958 = vsyncpa [#allocation4], 1 }
 0x3f4   :  { %1960 = vsyncpa [#allocation4 + $0x1], 1 }

</bundles_post_ra>
